<compile_context>
chip_gen: v7x
topology: tpu7x:2x2x1
jax: 0.10.0
libtpu: 0.0.40
codegen_flags: <defaults>
</compile_context>

<pallas_src>
import functools
import math

import jax
import jax.numpy as jnp
from jax.experimental import pallas as pl
from jax.experimental.pallas import tpu as pltpu


# ---------------------------------------------------------------------------
# Small helpers
# ---------------------------------------------------------------------------
def _round_up(x, m):
    return (x + m - 1) // m * m


def _pick_tile(dim, align, cap):
    """Tile size (multiple of `align`, <= cap) minimizing padding of `dim`."""
    d = _round_up(dim, align)
    if d <= cap:
        return d
    best_t, best_p = align, _round_up(d, align)
    for t in range(cap, align - 1, -align):
        p = _round_up(d, t)
        if p < best_p or (p == best_p and t > best_t):
            best_t, best_p = t, p
    return best_t


def _col_tile(n, cap=2048):
    """Largest multiple of 128 <= cap that divides n (fallback: full n)."""
    if n % 128 != 0:
        return n
    t = min(cap, n)
    t -= t % 128
    t = max(t, 128)
    while n % t:
        t -= 128
    return t


# ---------------------------------------------------------------------------
# Kernel 1: tiled channel-major matmul  W[M,K] @ X[K,N] + bias[M]  (+ReLU)
# ---------------------------------------------------------------------------
def _matmul_bias_kernel(a_ref, b_ref, bias_ref, o_ref, acc_ref, *, relu):
    @pl.when(pl.program_id(2) == 0)
    def _():
        acc_ref[...] = jnp.zeros_like(acc_ref)

    acc_ref[...] += jnp.dot(a_ref[...], b_ref[...],
                            preferred_element_type=jnp.float32)

    @pl.when(pl.program_id(2) == pl.num_programs(2) - 1)
    def _():
        acc = acc_ref[...] + bias_ref[...]        # bias broadcast along lanes
        if relu:
            acc = jnp.maximum(acc, 0.0)
        o_ref[...] = acc


def matmul_bias(a, b, bias, *, relu=False):
    """a: [M, K], b: [K, N], bias: [M] (per output row). Returns a @ b + bias."""
    M, K = a.shape
    K2, N = b.shape
    assert K == K2
    tm = _pick_tile(M, 8, 256)
    tn = _pick_tile(N, 128, 512)
    tk = _pick_tile(K, 128, 512)
    Mp, Np, Kp = _round_up(M, tm), _round_up(N, tn), _round_up(K, tk)
    a_p = jnp.pad(a.astype(jnp.float32), ((0, Mp - M), (0, Kp - K)))
    b_p = jnp.pad(b.astype(jnp.float32), ((0, Kp - K), (0, Np - N)))
    bias_p = jnp.pad(bias.astype(jnp.float32), (0, Mp - M)).reshape(Mp, 1)
    grid = (Mp // tm, Np // tn, Kp // tk)
    out = pl.pallas_call(
        functools.partial(_matmul_bias_kernel, relu=relu),
        out_shape=jax.ShapeDtypeStruct((Mp, Np), jnp.float32),
        grid=grid,
        in_specs=[pl.BlockSpec((tm, tk), lambda i, j, k: (i, k)),
                  pl.BlockSpec((tk, tn), lambda i, j, k: (k, j)),
                  pl.BlockSpec((tm, 1), lambda i, j, k: (i, 0))],
        out_specs=pl.BlockSpec((tm, tn), lambda i, j, k: (i, j)),
        scratch_shapes=[pltpu.VMEM((tm, tn), jnp.float32)],
        compiler_params=pltpu.CompilerParams(
            dimension_semantics=("parallel", "parallel", "arbitrary")),
        cost_estimate=pl.CostEstimate(
            flops=2 * Mp * Np * Kp, transcendentals=0,
            bytes_accessed=4 * (Mp * Kp + Kp * Np + Mp * Np)),
    )(a_p, b_p, bias_p)
    return out[:M, :N]


# ---------------------------------------------------------------------------
# Kernel 2: BatchNorm (training-mode batch stats), channel-major, tiled.
#   Pass 1: per-channel sum / sum-sq accumulated over M tiles.
#   Pass 2: normalize + affine (+ fused time-emb broadcast / skip add).
# ---------------------------------------------------------------------------
def _bn_stats_kernel(x_ref, mean_ref, rstd_ref, sum_ref, sq_ref, *,
                     inv_count, eps):
    i = pl.program_id(0)

    @pl.when(i == 0)
    def _():
        sum_ref[...] = jnp.zeros_like(sum_ref)
        sq_ref[...] = jnp.zeros_like(sq_ref)

    x = x_ref[...]
    sum_ref[...] += jnp.sum(x, axis=1, keepdims=True)
    sq_ref[...] += jnp.sum(x * x, axis=1, keepdims=True)

    @pl.when(i == pl.num_programs(0) - 1)
    def _():
        mean = sum_ref[...] * inv_count
        var = sq_ref[...] * inv_count - mean * mean   # biased var (PyTorch norm)
        mean_ref[...] = mean
        rstd_ref[...] = jax.lax.rsqrt(var + eps)


def _bn_apply_kernel(x_ref, mean_ref, rstd_ref, g_ref, b_ref, *rest,
                     has_te, has_add):
    o_ref = rest[-1]
    y = (x_ref[...] - mean_ref[...]) * (rstd_ref[...] * g_ref[...]) + b_ref[...]
    idx = 0
    if has_te:
        # time embedding block (1, C, 1): the batch column is already selected
        # by the BlockSpec index_map; broadcast over this spatial tile in VMEM.
        y = y + rest[idx][0]
        idx += 1
    if has_add:
        y = y + rest[idx][...]
        idx += 1
    o_ref[...] = y


def batchnorm_cm(x_cm, gamma, beta, *, B, HW, te=None, add=None, eps=1e-5):
    """x_cm: (C, B*HW) channel-major.  Optional te: (B, C, 1), add: (C, B*HW)."""
    C, M = x_cm.shape

    # Pass 1: per-channel batch statistics.
    ts = _col_tile(M, 2048)
    stat_spec = pl.BlockSpec((C, 1), lambda i: (0, 0))
    mean, rstd = pl.pallas_call(
        functools.partial(_bn_stats_kernel, inv_count=1.0 / float(M), eps=eps),
        out_shape=(jax.ShapeDtypeStruct((C, 1), jnp.float32),
                   jax.ShapeDtypeStruct((C, 1), jnp.float32)),
        grid=(M // ts,),
        in_specs=[pl.BlockSpec((C, ts), lambda i: (0, i))],
        out_specs=(stat_spec, stat_spec),
        scratch_shapes=[pltpu.VMEM((C, 1), jnp.float32),
                        pltpu.VMEM((C, 1), jnp.float32)],
        compiler_params=pltpu.CompilerParams(dimension_semantics=("arbitrary",)),
    )(x_cm)

    # Pass 2: normalize + affine (+ optional fused adds).
    has_te, has_add = te is not None, add is not None
    if has_te:
        ta = _col_tile(HW, 2048)
        n_hw = HW // ta
        grid = (B, n_hw)
        xmap = lambda bi, j: (0, bi * n_hw + j)
        cmap = lambda bi, j: (0, 0)
    else:
        ta = _col_tile(M, 2048)
        grid = (M // ta,)
        xmap = lambda i: (0, i)
        cmap = lambda i: (0, 0)

    in_specs = [pl.BlockSpec((C, ta), xmap),
                pl.BlockSpec((C, 1), cmap), pl.BlockSpec((C, 1), cmap),
                pl.BlockSpec((C, 1), cmap), pl.BlockSpec((C, 1), cmap)]
    args = [x_cm, mean, rstd,
            gamma.reshape(C, 1).astype(jnp.float32),
            beta.reshape(C, 1).astype(jnp.float32)]
    if has_te:
        # te is (B, C, 1); pick this batch element's column via the index_map.
        in_specs.append(pl.BlockSpec((1, C, 1), lambda bi, j: (bi, 0, 0)))
        args.append(te)
    if has_add:
        in_specs.append(pl.BlockSpec((C, ta), xmap))
        args.append(add)

    return pl.pallas_call(
        functools.partial(_bn_apply_kernel, has_te=has_te, has_add=has_add),
        out_shape=jax.ShapeDtypeStruct((C, M), jnp.float32),
        grid=grid,
        in_specs=in_specs,
        out_specs=pl.BlockSpec((C, ta), xmap),
        compiler_params=pltpu.CompilerParams(
            dimension_semantics=("parallel",) * len(grid)),
    )(*args)


# ---------------------------------------------------------------------------
# Kernel 3: MultiheadAttention core (batch_first=False quirk: L = B, N = H*W).
#   q/k/v: (E, B, HW) channel-major; grid = (head, HW tile).
# ---------------------------------------------------------------------------
def _attn_kernel(q_ref, k_ref, v_ref, o_ref, *, scale):
    hd, B, T = q_ref.shape
    q = q_ref[...]
    k = k_ref[...]
    v = v_ref[...]
    for b in range(B):                                   # seq length == batch
        qb = q[:, b:b + 1, :]                            # (hd, 1, T)
        s = jnp.sum(qb * k, axis=0) * scale              # (B, T)  scores
        m = jnp.max(s, axis=0, keepdims=True)
        p = jnp.exp(s - m)
        p = p / jnp.sum(p, axis=0, keepdims=True)        # softmax over keys
        o_ref[:, b, :] = jnp.sum(p[None, :, :] * v, axis=1)   # (hd, T)


def attention_core(q, k, v, *, nh, scale):
    E, B, HW = q.shape
    hd = E // nh
    cap = max(128, min(2048, (8 * 1024 * 1024) // (32 * hd * max(1, B))))
    t = _col_tile(HW, cap)
    spec = pl.BlockSpec((hd, B, t), lambda g, i: (g, 0, i))
    return pl.pallas_call(
        functools.partial(_attn_kernel, scale=scale),
        out_shape=jax.ShapeDtypeStruct((E, B, HW), jnp.float32),
        grid=(nh, HW // t),
        in_specs=[spec, spec, spec],
        out_specs=spec,
        compiler_params=pltpu.CompilerParams(
            dimension_semantics=("parallel", "parallel")),
    )(q, k, v)


# ---------------------------------------------------------------------------
# Conv2d as a channel-major matmul
# ---------------------------------------------------------------------------
def im2col_cm(x_cm, kh, kw, stride, pad):
    """x_cm: (C, B, H, W) -> patches [C*kh*kw, B*oh*ow]; K order = (C, kh, kw)."""
    C, B, H, W = x_cm.shape
    oh = (H + 2 * pad - kh) // stride + 1
    ow = (W + 2 * pad - kw) // stride + 1
    xp = jnp.pad(x_cm, ((0, 0), (0, 0), (pad, pad), (pad, pad)))
    taps = [xp[:, :, i:i + stride * oh:stride, j:j + stride * ow:stride]
            for i in range(kh) for j in range(kw)]
    patches = jnp.stack(taps, axis=1)                    # (C, kh*kw, B, oh, ow)
    return patches.reshape(C * kh * kw, B * oh * ow), oh, ow


# TODO(synk): fuse im2col into the conv matmul kernel (in-kernel loop over the
# kh*kw taps on shifted VMEM windows) so the kh*kw-expanded patch matrix never
# round-trips through HBM.
def conv2d_cm(x_cm, w, b, *, stride=1, pad=0, relu=False):
    """PyTorch Conv2d. x_cm: (C, B, H, W) -> (OC, B*oh*ow) channel-major."""
    OC, C, kh, kw = w.shape
    patches, _, _ = im2col_cm(x_cm, kh, kw, stride, pad)
    return matmul_bias(w.reshape(OC, C * kh * kw), patches, b, relu=relu)


# ---------------------------------------------------------------------------
# Full Block forward (up=False, ReLU, self-attention + skip connection)
# ---------------------------------------------------------------------------
def block_forward(params, x, t):
    B, Cin, H, W = x.shape
    OC = params["conv1_w"].shape[0]
    HW = H * W
    nh = 4
    E = OC
    hd = E // nh

    x_cm = jnp.transpose(x, (1, 0, 2, 3))                        # (Cin, B, H, W)

    # h = bnorm1(relu(conv1(x))) + time_emb   (te broadcast fused in BN kernel)
    h1 = conv2d_cm(x_cm, params["conv1_w"], params["conv1_b"],
                   stride=1, pad=1, relu=True)                   # (OC, B*HW)
    te = matmul_bias(params["time_w"], t.T, params["time_b"], relu=True)  # (OC, B)
    te_bc = te.T.reshape(B, OC, 1)                               # (B, OC, 1)
    h1 = batchnorm_cm(h1, params["bn1_g"], params["bn1_b"], B=B, HW=HW, te=te_bc)

    # Self-attention (L = B, N = H*W due to batch_first=False on (B, HW, C)).
    qkv = matmul_bias(params["in_proj_w"], h1, params["in_proj_b"])  # (3E, B*HW)
    qkv = qkv.reshape(3, E, B, HW)
    o = attention_core(qkv[0], qkv[1], qkv[2], nh=nh,
                       scale=1.0 / math.sqrt(hd))                # (E, B, HW)
    o = matmul_bias(params["out_proj_w"], o.reshape(E, B * HW),
                    params["out_proj_b"])                        # (E, B*HW)

    # PyTorch `.view(B, out_ch, H, W)` on the (B, H*W, C) tensor == raw reshape.
    h_view = jnp.transpose(o.reshape(E, B, HW), (1, 2, 0)).reshape(B, OC, H, W)
    h_cm = jnp.transpose(h_view, (1, 0, 2, 3))                   # (OC, B, H, W)

    # h = bnorm2(relu(conv2(h)))
    h2 = conv2d_cm(h_cm, params["conv2_w"], params["conv2_b"],
                   stride=1, pad=1, relu=True)
    h2 = batchnorm_cm(h2, params["bn2_g"], params["bn2_b"], B=B, HW=HW)

    # skip: BatchNorm(Conv1x1(x));  h = h + skip_x  (add fused into skip BN)
    s = conv2d_cm(x_cm, params["skip_w"], params["skip_b"], stride=1, pad=0)
    hsum = batchnorm_cm(s, params["skip_bn_g"], params["skip_bn_b"],
                        B=B, HW=HW, add=h2)                      # (OC, B*HW)

    # transform: Conv2d(out_ch, out_ch, 4, stride=2, padding=1)
    y = conv2d_cm(hsum.reshape(OC, B, H, W), params["tr_w"], params["tr_b"],
                  stride=2, pad=1)                               # (OC, B*oh*ow)
    oh, ow = H // 2, W // 2
    return jnp.transpose(y.reshape(OC, B, oh, ow), (1, 0, 2, 3))


# ---------------------------------------------------------------------------
# Deterministic parameter construction + smoke test
# ---------------------------------------------------------------------------
def make_params(key, in_ch, out_ch, time_emb_dim):
    ks = jax.random.split(key, 16)
    n = lambda k, shape: (0.1 * jax.random.normal(k, shape)).astype(jnp.float32)
    E = out_ch
    return {
        "conv1_w": n(ks[0], (out_ch, in_ch, 3, 3)),
        "conv1_b": n(ks[1], (out_ch,)),
        "conv2_w": n(ks[2], (out_ch, out_ch, 3, 3)),
        "conv2_b": n(ks[3], (out_ch,)),
        "time_w": n(ks[4], (out_ch, time_emb_dim)),   # PyTorch Linear weight [out, in]
        "time_b": n(ks[5], (out_ch,)),
        "bn1_g": jnp.ones((out_ch,), jnp.float32) + n(ks[6], (out_ch,)),
        "bn1_b": n(ks[7], (out_ch,)),
        "bn2_g": jnp.ones((out_ch,), jnp.float32) + n(ks[8], (out_ch,)),
        "bn2_b": n(ks[9], (out_ch,)),
        "in_proj_w": n(ks[10], (3 * E, E)),           # MultiheadAttention in_proj
        "in_proj_b": n(ks[11], (3 * E,)),
        "out_proj_w": n(ks[12], (E, E)),
        "out_proj_b": n(ks[13], (E,)),
        "skip_w": n(ks[14], (out_ch, in_ch, 1, 1)),
        "skip_b": n(ks[15], (out_ch,)),
        "skip_bn_g": jnp.ones((out_ch,), jnp.float32),
        "skip_bn_b": jnp.zeros((out_ch,), jnp.float32),
        "tr_w": n(jax.random.fold_in(key, 100), (out_ch, out_ch, 4, 4)),
        "tr_b": n(jax.random.fold_in(key, 101), (out_ch,)),
    }


if __name__ == "__main__":
    key = jax.random.PRNGKey(0)
    B, in_ch, H, W = 2, 4, 16, 16
    out_ch, time_emb_dim = 8, 32      # out_ch must be divisible by num_heads=4

    kx, kt, kp = jax.random.split(key, 3)
    x = jax.random.normal(kx, (B, in_ch, H, W), jnp.float32)
    t = jax.random.normal(kt, (B, time_emb_dim), jnp.float32)
    params = make_params(kp, in_ch, out_ch, time_emb_dim)

    out = jax.jit(block_forward)(params, x, t)
    jax.block_until_ready(out)
    assert out.shape == (B, out_ch, H // 2, W // 2), out.shape
    assert jnp.all(jnp.isfinite(out))
    print("KERNEL_OK")
</pallas_src>

<mosaic_0001>
module attributes {stable_mosaic.version = 11 : i64} {
  func.func @_bn_stats_kernel(%arg0: i32, %arg1: memref<8x512xf32, #tpu.memory_space<vmem>>, %arg2: memref<8x1xf32, #tpu.memory_space<vmem>>, %arg3: memref<8x1xf32, #tpu.memory_space<vmem>>, %arg4: memref<8x1xf32, #tpu.memory_space<vmem>>, %arg5: memref<8x1xf32, #tpu.memory_space<vmem>>) attributes {dimension_semantics = [#tpu.dimension_semantics<arbitrary>], iteration_bounds = array<i64: 1>, scalar_prefetch = 0 : i64, scratch_operands = 2 : i64, tpu.core_type = #tpu.core_type<tc>, window_params = [{transform_indices = @transform_0, window_bounds = array<i64: 8, 512>}, {pipeline_mode = #tpu.pipeline_mode<synchronous>, transform_indices = @transform_1, window_bounds = array<i64: 8, 1>}, {pipeline_mode = #tpu.pipeline_mode<synchronous>, transform_indices = @transform_2, window_bounds = array<i64: 8, 1>}]} {
    %c0_i32 = arith.constant 0 : i32
    %0 = arith.cmpi eq, %arg0, %c0_i32 : i32
    %1 = arith.extui %0 : i1 to i32
    %c0_i32_0 = arith.constant 0 : i32
    %2 = arith.cmpi ne, %1, %c0_i32_0 : i32
    scf.if %2 {
      %cst_13 = arith.constant 0.000000e+00 : f32
      %18 = vector.broadcast %cst_13 : f32 to vector<8x1xf32>
      %c0_14 = arith.constant 0 : index
      %c0_15 = arith.constant 0 : index
      %19 = vector.load %arg4[%c0_14, %c0_15] : memref<8x1xf32, #tpu.memory_space<vmem>>, vector<8x1xf32>
      tpu.vector_store %arg4[%c0_14, %c0_15], %18 {strides = array<i32>} : memref<8x1xf32, #tpu.memory_space<vmem>>, vector<8x1xf32>,
      %cst_16 = arith.constant 0.000000e+00 : f32
      %20 = vector.broadcast %cst_16 : f32 to vector<8x1xf32>
      %c0_17 = arith.constant 0 : index
      %c0_18 = arith.constant 0 : index
      %21 = vector.load %arg5[%c0_17, %c0_18] : memref<8x1xf32, #tpu.memory_space<vmem>>, vector<8x1xf32>
      tpu.vector_store %arg5[%c0_17, %c0_18], %20 {strides = array<i32>} : memref<8x1xf32, #tpu.memory_space<vmem>>, vector<8x1xf32>,
    } else {
    }
    %c0 = arith.constant 0 : index
    %c0_1 = arith.constant 0 : index
    %3 = vector.load %arg1[%c0, %c0_1] : memref<8x512xf32, #tpu.memory_space<vmem>>, vector<8x512xf32>
    %c0_2 = arith.constant 0 : index
    %c0_3 = arith.constant 0 : index
    %4 = vector.load %arg4[%c0_2, %c0_3] : memref<8x1xf32, #tpu.memory_space<vmem>>, vector<8x1xf32>
    %cst = arith.constant dense<0.000000e+00> : vector<8xf32>
    %5 = vector.multi_reduction <add>, %3, %cst [1] : vector<8x512xf32> to vector<8xf32>
    %6 = vector.shape_cast %5 : vector<8xf32> to vector<8x1xf32>
    %7 = arith.addf %4, %6 : vector<8x1xf32>
    %c0_4 = arith.constant 0 : index
    %c0_5 = arith.constant 0 : index
    %8 = vector.load %arg4[%c0_4, %c0_5] : memref<8x1xf32, #tpu.memory_space<vmem>>, vector<8x1xf32>
    tpu.vector_store %arg4[%c0_4, %c0_5], %7 {strides = array<i32>} : memref<8x1xf32, #tpu.memory_space<vmem>>, vector<8x1xf32>,
    %c0_6 = arith.constant 0 : index
    %c0_7 = arith.constant 0 : index
    %9 = vector.load %arg5[%c0_6, %c0_7] : memref<8x1xf32, #tpu.memory_space<vmem>>, vector<8x1xf32>
    %10 = arith.mulf %3, %3 : vector<8x512xf32>
    %cst_8 = arith.constant dense<0.000000e+00> : vector<8xf32>
    %11 = vector.multi_reduction <add>, %10, %cst_8 [1] : vector<8x512xf32> to vector<8xf32>
    %12 = vector.shape_cast %11 : vector<8xf32> to vector<8x1xf32>
    %13 = arith.addf %9, %12 : vector<8x1xf32>
    %c0_9 = arith.constant 0 : index
    %c0_10 = arith.constant 0 : index
    %14 = vector.load %arg5[%c0_9, %c0_10] : memref<8x1xf32, #tpu.memory_space<vmem>>, vector<8x1xf32>
    tpu.vector_store %arg5[%c0_9, %c0_10], %13 {strides = array<i32>} : memref<8x1xf32, #tpu.memory_space<vmem>>, vector<8x1xf32>,
    %c0_i32_11 = arith.constant 0 : i32
    %15 = arith.cmpi eq, %arg0, %c0_i32_11 : i32
    %16 = arith.extui %15 : i1 to i32
    %c0_i32_12 = arith.constant 0 : i32
    %17 = arith.cmpi ne, %16, %c0_i32_12 : i32
    scf.if %17 {
      %c0_13 = arith.constant 0 : index
      %c0_14 = arith.constant 0 : index
      %18 = vector.load %arg4[%c0_13, %c0_14] : memref<8x1xf32, #tpu.memory_space<vmem>>, vector<8x1xf32>
      %cst_15 = arith.constant 0.001953125 : f32
      %19 = vector.broadcast %cst_15 : f32 to vector<8x1xf32>
      %20 = arith.mulf %18, %19 : vector<8x1xf32>
      %c0_16 = arith.constant 0 : index
      %c0_17 = arith.constant 0 : index
      %21 = vector.load %arg5[%c0_16, %c0_17] : memref<8x1xf32, #tpu.memory_space<vmem>>, vector<8x1xf32>
      %cst_18 = arith.constant 0.001953125 : f32
      %22 = vector.broadcast %cst_18 : f32 to vector<8x1xf32>
      %23 = arith.mulf %21, %22 : vector<8x1xf32>
      %24 = arith.mulf %20, %20 : vector<8x1xf32>
      %25 = arith.subf %23, %24 : vector<8x1xf32>
      %c0_19 = arith.constant 0 : index
      %c0_20 = arith.constant 0 : index
      %26 = vector.load %arg2[%c0_19, %c0_20] : memref<8x1xf32, #tpu.memory_space<vmem>>, vector<8x1xf32>
      tpu.vector_store %arg2[%c0_19, %c0_20], %20 {strides = array<i32>} : memref<8x1xf32, #tpu.memory_space<vmem>>, vector<8x1xf32>,
      %cst_21 = arith.constant 9.99999974E-6 : f32
      %27 = vector.broadcast %cst_21 : f32 to vector<8x1xf32>
      %28 = arith.addf %25, %27 : vector<8x1xf32>
      %29 = math.rsqrt %28 : vector<8x1xf32>
      %c0_22 = arith.constant 0 : index
      %c0_23 = arith.constant 0 : index
      %30 = vector.load %arg3[%c0_22, %c0_23] : memref<8x1xf32, #tpu.memory_space<vmem>>, vector<8x1xf32>
      tpu.vector_store %arg3[%c0_22, %c0_23], %29 {strides = array<i32>} : memref<8x1xf32, #tpu.memory_space<vmem>>, vector<8x1xf32>,
    } else {
    }
    return
  }
  func.func @transform_0(%arg0: i32) -> (i32, i32) {
    %c0_i32 = arith.constant 0 : i32
    %c0_i32_0 = arith.constant 0 : i32
    return %c0_i32, %arg0 : i32, i32
  }
  func.func @transform_1(%arg0: i32) -> (i32, i32) {
    %c0_i32 = arith.constant 0 : i32
    %c0_i32_0 = arith.constant 0 : i32
    %c0_i32_1 = arith.constant 0 : i32
    return %c0_i32, %c0_i32_0 : i32, i32
  }
  func.func @transform_2(%arg0: i32) -> (i32, i32) {
    %c0_i32 = arith.constant 0 : i32
    %c0_i32_0 = arith.constant 0 : i32
    %c0_i32_1 = arith.constant 0 : i32
    return %c0_i32, %c0_i32_0 : i32, i32
  }
}

module attributes {stable_mosaic.version = 11 : i64} {
  func.func @_matmul_bias_kernel(%arg0: i32, %arg1: i32, %arg2: i32, %arg3: memref<8x128xf32, #tpu.memory_space<vmem>>, %arg4: memref<128x128xf32, #tpu.memory_space<vmem>>, %arg5: memref<8x1xf32, #tpu.memory_space<vmem>>, %arg6: memref<8x128xf32, #tpu.memory_space<vmem>>, %arg7: memref<8x128xf32, #tpu.memory_space<vmem>>) attributes {dimension_semantics = [#tpu.dimension_semantics<parallel>, #tpu.dimension_semantics<parallel>, #tpu.dimension_semantics<arbitrary>], iteration_bounds = array<i64: 1, 1, 1>, scalar_prefetch = 0 : i64, scratch_operands = 1 : i64, tpu.core_type = #tpu.core_type<tc>, window_params = [{transform_indices = @transform_0, window_bounds = array<i64: 8, 128>}, {transform_indices = @transform_1, window_bounds = array<i64: 128, 128>}, {transform_indices = @transform_2, window_bounds = array<i64: 8, 1>}, {transform_indices = @transform_3, window_bounds = array<i64: 8, 128>}]} {
    %c0_i32 = arith.constant 0 : i32
    %0 = arith.cmpi eq, %arg2, %c0_i32 : i32
    %1 = arith.extui %0 : i1 to i32
    %c0_i32_0 = arith.constant 0 : i32
    %2 = arith.cmpi ne, %1, %c0_i32_0 : i32
    scf.if %2 {
      %cst_10 = arith.constant 0.000000e+00 : f32
      %12 = vector.broadcast %cst_10 : f32 to vector<8x128xf32>
      %c0_11 = arith.constant 0 : index
      %c0_12 = arith.constant 0 : index
      %13 = vector.load %arg7[%c0_11, %c0_12] : memref<8x128xf32, #tpu.memory_space<vmem>>, vector<8x128xf32>
      tpu.vector_store %arg7[%c0_11, %c0_12], %12 {strides = array<i32>} : memref<8x128xf32, #tpu.memory_space<vmem>>, vector<8x128xf32>,
    } else {
    }
    %c0 = arith.constant 0 : index
    %c0_1 = arith.constant 0 : index
    %3 = vector.load %arg7[%c0, %c0_1] : memref<8x128xf32, #tpu.memory_space<vmem>>, vector<8x128xf32>
    %c0_2 = arith.constant 0 : index
    %c0_3 = arith.constant 0 : index
    %4 = vector.load %arg3[%c0_2, %c0_3] : memref<8x128xf32, #tpu.memory_space<vmem>>, vector<8x128xf32>
    %c0_4 = arith.constant 0 : index
    %c0_5 = arith.constant 0 : index
    %5 = vector.load %arg4[%c0_4, %c0_5] : memref<128x128xf32, #tpu.memory_space<vmem>>, vector<128x128xf32>
    %cst = arith.constant dense<0.000000e+00> : vector<8x128xf32>
    %6 = tpu.matmul %4, %5, %cst {dimension_numbers = #tpu.dot_dimension_numbers<[1], [0], [0], [1], [0, 0, 1, 1], [], []>} : vector<8x128xf32>, vector<128x128xf32>, vector<8x128xf32> -> vector<8x128xf32>
    %7 = arith.addf %3, %6 : vector<8x128xf32>
    %c0_6 = arith.constant 0 : index
    %c0_7 = arith.constant 0 : index
    %8 = vector.load %arg7[%c0_6, %c0_7] : memref<8x128xf32, #tpu.memory_space<vmem>>, vector<8x128xf32>
    tpu.vector_store %arg7[%c0_6, %c0_7], %7 {strides = array<i32>} : memref<8x128xf32, #tpu.memory_space<vmem>>, vector<8x128xf32>,
    %c0_i32_8 = arith.constant 0 : i32
    %9 = arith.cmpi eq, %arg2, %c0_i32_8 : i32
    %10 = arith.extui %9 : i1 to i32
    %c0_i32_9 = arith.constant 0 : i32
    %11 = arith.cmpi ne, %10, %c0_i32_9 : i32
    scf.if %11 {
      %c0_10 = arith.constant 0 : index
      %c0_11 = arith.constant 0 : index
      %12 = vector.load %arg7[%c0_10, %c0_11] : memref<8x128xf32, #tpu.memory_space<vmem>>, vector<8x128xf32>
      %c0_12 = arith.constant 0 : index
      %c0_13 = arith.constant 0 : index
      %13 = vector.load %arg5[%c0_12, %c0_13] : memref<8x1xf32, #tpu.memory_space<vmem>>, vector<8x1xf32>
      %14 = vector.broadcast %13 : vector<8x1xf32> to vector<8x128xf32>
      %15 = arith.addf %12, %14 : vector<8x128xf32>
      %cst_14 = arith.constant 0.000000e+00 : f32
      %16 = vector.broadcast %cst_14 : f32 to vector<8x128xf32>
      %17 = arith.maximumf %15, %16 : vector<8x128xf32>
      %c0_15 = arith.constant 0 : index
      %c0_16 = arith.constant 0 : index
      %18 = vector.load %arg6[%c0_15, %c0_16] : memref<8x128xf32, #tpu.memory_space<vmem>>, vector<8x128xf32>
      tpu.vector_store %arg6[%c0_15, %c0_16], %17 {strides = array<i32>} : memref<8x128xf32, #tpu.memory_space<vmem>>, vector<8x128xf32>,
    } else {
    }
    return
  }
  func.func @transform_0(%arg0: i32, %arg1: i32, %arg2: i32) -> (i32, i32) {
    %c0_i32 = arith.constant 0 : i32
    return %arg0, %arg2 : i32, i32
  }
  func.func @transform_1(%arg0: i32, %arg1: i32, %arg2: i32) -> (i32, i32) {
    %c0_i32 = arith.constant 0 : i32
    return %arg2, %arg1 : i32, i32
  }
  func.func @transform_2(%arg0: i32, %arg1: i32, %arg2: i32) -> (i32, i32) {
    %c0_i32 = arith.constant 0 : i32
    %c0_i32_0 = arith.constant 0 : i32
    return %arg0, %c0_i32 : i32, i32
  }
  func.func @transform_3(%arg0: i32, %arg1: i32, %arg2: i32) -> (i32, i32) {
    %c0_i32 = arith.constant 0 : i32
    return %arg0, %arg1 : i32, i32
  }
}

module attributes {stable_mosaic.version = 11 : i64} {
  func.func @_matmul_bias_kernel(%arg0: i32, %arg1: i32, %arg2: i32, %arg3: memref<8x128xf32, #tpu.memory_space<vmem>>, %arg4: memref<128x512xf32, #tpu.memory_space<vmem>>, %arg5: memref<8x1xf32, #tpu.memory_space<vmem>>, %arg6: memref<8x512xf32, #tpu.memory_space<vmem>>, %arg7: memref<8x512xf32, #tpu.memory_space<vmem>>) attributes {dimension_semantics = [#tpu.dimension_semantics<parallel>, #tpu.dimension_semantics<parallel>, #tpu.dimension_semantics<arbitrary>], iteration_bounds = array<i64: 1, 1, 1>, scalar_prefetch = 0 : i64, scratch_operands = 1 : i64, tpu.core_type = #tpu.core_type<tc>, window_params = [{transform_indices = @transform_0, window_bounds = array<i64: 8, 128>}, {transform_indices = @transform_1, window_bounds = array<i64: 128, 512>}, {transform_indices = @transform_2, window_bounds = array<i64: 8, 1>}, {transform_indices = @transform_3, window_bounds = array<i64: 8, 512>}]} {
    %c0_i32 = arith.constant 0 : i32
    %0 = arith.cmpi eq, %arg2, %c0_i32 : i32
    %1 = arith.extui %0 : i1 to i32
    %c0_i32_0 = arith.constant 0 : i32
    %2 = arith.cmpi ne, %1, %c0_i32_0 : i32
    scf.if %2 {
      %cst_10 = arith.constant 0.000000e+00 : f32
      %12 = vector.broadcast %cst_10 : f32 to vector<8x512xf32>
      %c0_11 = arith.constant 0 : index
      %c0_12 = arith.constant 0 : index
      %13 = vector.load %arg7[%c0_11, %c0_12] : memref<8x512xf32, #tpu.memory_space<vmem>>, vector<8x512xf32>
      tpu.vector_store %arg7[%c0_11, %c0_12], %12 {strides = array<i32>} : memref<8x512xf32, #tpu.memory_space<vmem>>, vector<8x512xf32>,
    } else {
    }
    %c0 = arith.constant 0 : index
    %c0_1 = arith.constant 0 : index
    %3 = vector.load %arg7[%c0, %c0_1] : memref<8x512xf32, #tpu.memory_space<vmem>>, vector<8x512xf32>
    %c0_2 = arith.constant 0 : index
    %c0_3 = arith.constant 0 : index
    %4 = vector.load %arg3[%c0_2, %c0_3] : memref<8x128xf32, #tpu.memory_space<vmem>>, vector<8x128xf32>
    %c0_4 = arith.constant 0 : index
    %c0_5 = arith.constant 0 : index
    %5 = vector.load %arg4[%c0_4, %c0_5] : memref<128x512xf32, #tpu.memory_space<vmem>>, vector<128x512xf32>
    %cst = arith.constant dense<0.000000e+00> : vector<8x512xf32>
    %6 = tpu.matmul %4, %5, %cst {dimension_numbers = #tpu.dot_dimension_numbers<[1], [0], [0], [1], [0, 0, 1, 1], [], []>} : vector<8x128xf32>, vector<128x512xf32>, vector<8x512xf32> -> vector<8x512xf32>
    %7 = arith.addf %3, %6 : vector<8x512xf32>
    %c0_6 = arith.constant 0 : index
    %c0_7 = arith.constant 0 : index
    %8 = vector.load %arg7[%c0_6, %c0_7] : memref<8x512xf32, #tpu.memory_space<vmem>>, vector<8x512xf32>
    tpu.vector_store %arg7[%c0_6, %c0_7], %7 {strides = array<i32>} : memref<8x512xf32, #tpu.memory_space<vmem>>, vector<8x512xf32>,
    %c0_i32_8 = arith.constant 0 : i32
    %9 = arith.cmpi eq, %arg2, %c0_i32_8 : i32
    %10 = arith.extui %9 : i1 to i32
    %c0_i32_9 = arith.constant 0 : i32
    %11 = arith.cmpi ne, %10, %c0_i32_9 : i32
    scf.if %11 {
      %c0_10 = arith.constant 0 : index
      %c0_11 = arith.constant 0 : index
      %12 = vector.load %arg7[%c0_10, %c0_11] : memref<8x512xf32, #tpu.memory_space<vmem>>, vector<8x512xf32>
      %c0_12 = arith.constant 0 : index
      %c0_13 = arith.constant 0 : index
      %13 = vector.load %arg5[%c0_12, %c0_13] : memref<8x1xf32, #tpu.memory_space<vmem>>, vector<8x1xf32>
      %14 = vector.broadcast %13 : vector<8x1xf32> to vector<8x512xf32>
      %15 = arith.addf %12, %14 : vector<8x512xf32>
      %cst_14 = arith.constant 0.000000e+00 : f32
      %16 = vector.broadcast %cst_14 : f32 to vector<8x512xf32>
      %17 = arith.maximumf %15, %16 : vector<8x512xf32>
      %c0_15 = arith.constant 0 : index
      %c0_16 = arith.constant 0 : index
      %18 = vector.load %arg6[%c0_15, %c0_16] : memref<8x512xf32, #tpu.memory_space<vmem>>, vector<8x512xf32>
      tpu.vector_store %arg6[%c0_15, %c0_16], %17 {strides = array<i32>} : memref<8x512xf32, #tpu.memory_space<vmem>>, vector<8x512xf32>,
    } else {
    }
    return
  }
  func.func @transform_0(%arg0: i32, %arg1: i32, %arg2: i32) -> (i32, i32) {
    %c0_i32 = arith.constant 0 : i32
    return %arg0, %arg2 : i32, i32
  }
  func.func @transform_1(%arg0: i32, %arg1: i32, %arg2: i32) -> (i32, i32) {
    %c0_i32 = arith.constant 0 : i32
    return %arg2, %arg1 : i32, i32
  }
  func.func @transform_2(%arg0: i32, %arg1: i32, %arg2: i32) -> (i32, i32) {
    %c0_i32 = arith.constant 0 : i32
    %c0_i32_0 = arith.constant 0 : i32
    return %arg0, %c0_i32 : i32, i32
  }
  func.func @transform_3(%arg0: i32, %arg1: i32, %arg2: i32) -> (i32, i32) {
    %c0_i32 = arith.constant 0 : i32
    return %arg0, %arg1 : i32, i32
  }
}

module attributes {stable_mosaic.version = 11 : i64} {
  func.func @_bn_apply_kernel(%arg0: i32, %arg1: i32, %arg2: memref<8x256xf32, #tpu.memory_space<vmem>>, %arg3: memref<8x1xf32, #tpu.memory_space<vmem>>, %arg4: memref<8x1xf32, #tpu.memory_space<vmem>>, %arg5: memref<8x1xf32, #tpu.memory_space<vmem>>, %arg6: memref<8x1xf32, #tpu.memory_space<vmem>>, %arg7: memref<1x8x1xf32, #tpu.memory_space<vmem>>, %arg8: memref<8x256xf32, #tpu.memory_space<vmem>>) attributes {dimension_semantics = [#tpu.dimension_semantics<parallel>, #tpu.dimension_semantics<parallel>], iteration_bounds = array<i64: 2, 1>, scalar_prefetch = 0 : i64, scratch_operands = 0 : i64, tpu.core_type = #tpu.core_type<tc>, window_params = [{transform_indices = @transform_0, window_bounds = array<i64: 8, 256>}, {pipeline_mode = #tpu.pipeline_mode<synchronous>, transform_indices = @transform_1, window_bounds = array<i64: 8, 1>}, {pipeline_mode = #tpu.pipeline_mode<synchronous>, transform_indices = @transform_2, window_bounds = array<i64: 8, 1>}, {pipeline_mode = #tpu.pipeline_mode<synchronous>, transform_indices = @transform_3, window_bounds = array<i64: 8, 1>}, {pipeline_mode = #tpu.pipeline_mode<synchronous>, transform_indices = @transform_4, window_bounds = array<i64: 8, 1>}, {transform_indices = @transform_5, window_bounds = array<i64: 1, 8, 1>}, {transform_indices = @transform_6, window_bounds = array<i64: 8, 256>}]} {
    %c0 = arith.constant 0 : index
    %c0_0 = arith.constant 0 : index
    %0 = vector.load %arg2[%c0, %c0_0] : memref<8x256xf32, #tpu.memory_space<vmem>>, vector<8x256xf32>
    %c0_1 = arith.constant 0 : index
    %c0_2 = arith.constant 0 : index
    %1 = vector.load %arg3[%c0_1, %c0_2] : memref<8x1xf32, #tpu.memory_space<vmem>>, vector<8x1xf32>
    %2 = vector.broadcast %1 : vector<8x1xf32> to vector<8x256xf32>
    %3 = arith.subf %0, %2 : vector<8x256xf32>
    %c0_3 = arith.constant 0 : index
    %c0_4 = arith.constant 0 : index
    %4 = vector.load %arg4[%c0_3, %c0_4] : memref<8x1xf32, #tpu.memory_space<vmem>>, vector<8x1xf32>
    %c0_5 = arith.constant 0 : index
    %c0_6 = arith.constant 0 : index
    %5 = vector.load %arg5[%c0_5, %c0_6] : memref<8x1xf32, #tpu.memory_space<vmem>>, vector<8x1xf32>
    %6 = arith.mulf %4, %5 : vector<8x1xf32>
    %7 = vector.broadcast %6 : vector<8x1xf32> to vector<8x256xf32>
    %8 = arith.mulf %3, %7 : vector<8x256xf32>
    %c0_7 = arith.constant 0 : index
    %c0_8 = arith.constant 0 : index
    %9 = vector.load %arg6[%c0_7, %c0_8] : memref<8x1xf32, #tpu.memory_space<vmem>>, vector<8x1xf32>
    %10 = vector.broadcast %9 : vector<8x1xf32> to vector<8x256xf32>
    %11 = arith.addf %8, %10 : vector<8x256xf32>
    %c0_9 = arith.constant 0 : index
    %c0_10 = arith.constant 0 : index
    %c0_11 = arith.constant 0 : index
    %12 = vector.load %arg7[%c0_9, %c0_10, %c0_11] : memref<1x8x1xf32, #tpu.memory_space<vmem>>, vector<1x8x1xf32>
    %13 = vector.shape_cast %12 : vector<1x8x1xf32> to vector<8x1xf32>
    %14 = vector.broadcast %13 : vector<8x1xf32> to vector<8x256xf32>
    %15 = arith.addf %11, %14 : vector<8x256xf32>
    %c0_12 = arith.constant 0 : index
    %c0_13 = arith.constant 0 : index
    %16 = vector.load %arg8[%c0_12, %c0_13] : memref<8x256xf32, #tpu.memory_space<vmem>>, vector<8x256xf32>
    tpu.vector_store %arg8[%c0_12, %c0_13], %15 {strides = array<i32>} : memref<8x256xf32, #tpu.memory_space<vmem>>, vector<8x256xf32>,
    return
  }
  func.func @transform_0(%arg0: i32, %arg1: i32) -> (i32, i32) {
    %c1_i32 = arith.constant 1 : i32
    %0 = arith.muli %arg0, %c1_i32 : i32
    %1 = arith.addi %0, %arg1 : i32
    %c0_i32 = arith.constant 0 : i32
    %c0_i32_0 = arith.constant 0 : i32
    return %c0_i32, %1 : i32, i32
  }
  func.func @transform_1(%arg0: i32, %arg1: i32) -> (i32, i32) {
    %c0_i32 = arith.constant 0 : i32
    %c0_i32_0 = arith.constant 0 : i32
    %c0_i32_1 = arith.constant 0 : i32
    return %c0_i32, %c0_i32_0 : i32, i32
  }
  func.func @transform_2(%arg0: i32, %arg1: i32) -> (i32, i32) {
    %c0_i32 = arith.constant 0 : i32
    %c0_i32_0 = arith.constant 0 : i32
    %c0_i32_1 = arith.constant 0 : i32
    return %c0_i32, %c0_i32_0 : i32, i32
  }
  func.func @transform_3(%arg0: i32, %arg1: i32) -> (i32, i32) {
    %c0_i32 = arith.constant 0 : i32
    %c0_i32_0 = arith.constant 0 : i32
    %c0_i32_1 = arith.constant 0 : i32
    return %c0_i32, %c0_i32_0 : i32, i32
  }
  func.func @transform_4(%arg0: i32, %arg1: i32) -> (i32, i32) {
    %c0_i32 = arith.constant 0 : i32
    %c0_i32_0 = arith.constant 0 : i32
    %c0_i32_1 = arith.constant 0 : i32
    return %c0_i32, %c0_i32_0 : i32, i32
  }
  func.func @transform_5(%arg0: i32, %arg1: i32) -> (i32, i32, i32) {
    %c0_i32 = arith.constant 0 : i32
    %c0_i32_0 = arith.constant 0 : i32
    %c0_i32_1 = arith.constant 0 : i32
    return %arg0, %c0_i32, %c0_i32_0 : i32, i32, i32
  }
  func.func @transform_6(%arg0: i32, %arg1: i32) -> (i32, i32) {
    %c1_i32 = arith.constant 1 : i32
    %0 = arith.muli %arg0, %c1_i32 : i32
    %1 = arith.addi %0, %arg1 : i32
    %c0_i32 = arith.constant 0 : i32
    %c0_i32_0 = arith.constant 0 : i32
    return %c0_i32, %1 : i32, i32
  }
}

module attributes {stable_mosaic.version = 11 : i64} {
  func.func @_matmul_bias_kernel(%arg0: i32, %arg1: i32, %arg2: i32, %arg3: memref<24x128xf32, #tpu.memory_space<vmem>>, %arg4: memref<128x512xf32, #tpu.memory_space<vmem>>, %arg5: memref<24x1xf32, #tpu.memory_space<vmem>>, %arg6: memref<24x512xf32, #tpu.memory_space<vmem>>, %arg7: memref<24x512xf32, #tpu.memory_space<vmem>>) attributes {dimension_semantics = [#tpu.dimension_semantics<parallel>, #tpu.dimension_semantics<parallel>, #tpu.dimension_semantics<arbitrary>], iteration_bounds = array<i64: 1, 1, 1>, scalar_prefetch = 0 : i64, scratch_operands = 1 : i64, tpu.core_type = #tpu.core_type<tc>, window_params = [{transform_indices = @transform_0, window_bounds = array<i64: 24, 128>}, {transform_indices = @transform_1, window_bounds = array<i64: 128, 512>}, {transform_indices = @transform_2, window_bounds = array<i64: 24, 1>}, {transform_indices = @transform_3, window_bounds = array<i64: 24, 512>}]} {
    %c0_i32 = arith.constant 0 : i32
    %0 = arith.cmpi eq, %arg2, %c0_i32 : i32
    %1 = arith.extui %0 : i1 to i32
    %c0_i32_0 = arith.constant 0 : i32
    %2 = arith.cmpi ne, %1, %c0_i32_0 : i32
    scf.if %2 {
      %cst_10 = arith.constant 0.000000e+00 : f32
      %12 = vector.broadcast %cst_10 : f32 to vector<24x512xf32>
      %c0_11 = arith.constant 0 : index
      %c0_12 = arith.constant 0 : index
      %13 = vector.load %arg7[%c0_11, %c0_12] : memref<24x512xf32, #tpu.memory_space<vmem>>, vector<24x512xf32>
      tpu.vector_store %arg7[%c0_11, %c0_12], %12 {strides = array<i32>} : memref<24x512xf32, #tpu.memory_space<vmem>>, vector<24x512xf32>,
    } else {
    }
    %c0 = arith.constant 0 : index
    %c0_1 = arith.constant 0 : index
    %3 = vector.load %arg7[%c0, %c0_1] : memref<24x512xf32, #tpu.memory_space<vmem>>, vector<24x512xf32>
    %c0_2 = arith.constant 0 : index
    %c0_3 = arith.constant 0 : index
    %4 = vector.load %arg3[%c0_2, %c0_3] : memref<24x128xf32, #tpu.memory_space<vmem>>, vector<24x128xf32>
    %c0_4 = arith.constant 0 : index
    %c0_5 = arith.constant 0 : index
    %5 = vector.load %arg4[%c0_4, %c0_5] : memref<128x512xf32, #tpu.memory_space<vmem>>, vector<128x512xf32>
    %cst = arith.constant dense<0.000000e+00> : vector<24x512xf32>
    %6 = tpu.matmul %4, %5, %cst {dimension_numbers = #tpu.dot_dimension_numbers<[1], [0], [0], [1], [0, 0, 1, 1], [], []>} : vector<24x128xf32>, vector<128x512xf32>, vector<24x512xf32> -> vector<24x512xf32>
    %7 = arith.addf %3, %6 : vector<24x512xf32>
    %c0_6 = arith.constant 0 : index
    %c0_7 = arith.constant 0 : index
    %8 = vector.load %arg7[%c0_6, %c0_7] : memref<24x512xf32, #tpu.memory_space<vmem>>, vector<24x512xf32>
    tpu.vector_store %arg7[%c0_6, %c0_7], %7 {strides = array<i32>} : memref<24x512xf32, #tpu.memory_space<vmem>>, vector<24x512xf32>,
    %c0_i32_8 = arith.constant 0 : i32
    %9 = arith.cmpi eq, %arg2, %c0_i32_8 : i32
    %10 = arith.extui %9 : i1 to i32
    %c0_i32_9 = arith.constant 0 : i32
    %11 = arith.cmpi ne, %10, %c0_i32_9 : i32
    scf.if %11 {
      %c0_10 = arith.constant 0 : index
      %c0_11 = arith.constant 0 : index
      %12 = vector.load %arg7[%c0_10, %c0_11] : memref<24x512xf32, #tpu.memory_space<vmem>>, vector<24x512xf32>
      %c0_12 = arith.constant 0 : index
      %c0_13 = arith.constant 0 : index
      %13 = vector.load %arg5[%c0_12, %c0_13] : memref<24x1xf32, #tpu.memory_space<vmem>>, vector<24x1xf32>
      %14 = vector.broadcast %13 : vector<24x1xf32> to vector<24x512xf32>
      %15 = arith.addf %12, %14 : vector<24x512xf32>
      %c0_14 = arith.constant 0 : index
      %c0_15 = arith.constant 0 : index
      %16 = vector.load %arg6[%c0_14, %c0_15] : memref<24x512xf32, #tpu.memory_space<vmem>>, vector<24x512xf32>
      tpu.vector_store %arg6[%c0_14, %c0_15], %15 {strides = array<i32>} : memref<24x512xf32, #tpu.memory_space<vmem>>, vector<24x512xf32>,
    } else {
    }
    return
  }
  func.func @transform_0(%arg0: i32, %arg1: i32, %arg2: i32) -> (i32, i32) {
    %c0_i32 = arith.constant 0 : i32
    return %arg0, %arg2 : i32, i32
  }
  func.func @transform_1(%arg0: i32, %arg1: i32, %arg2: i32) -> (i32, i32) {
    %c0_i32 = arith.constant 0 : i32
    return %arg2, %arg1 : i32, i32
  }
  func.func @transform_2(%arg0: i32, %arg1: i32, %arg2: i32) -> (i32, i32) {
    %c0_i32 = arith.constant 0 : i32
    %c0_i32_0 = arith.constant 0 : i32
    return %arg0, %c0_i32 : i32, i32
  }
  func.func @transform_3(%arg0: i32, %arg1: i32, %arg2: i32) -> (i32, i32) {
    %c0_i32 = arith.constant 0 : i32
    return %arg0, %arg1 : i32, i32
  }
}

module attributes {stable_mosaic.version = 11 : i64} {
  func.func @_attn_kernel(%arg0: i32, %arg1: i32, %arg2: memref<2x2x256xf32, #tpu.memory_space<vmem>>, %arg3: memref<2x2x256xf32, #tpu.memory_space<vmem>>, %arg4: memref<2x2x256xf32, #tpu.memory_space<vmem>>, %arg5: memref<2x2x256xf32, #tpu.memory_space<vmem>>) attributes {dimension_semantics = [#tpu.dimension_semantics<parallel>, #tpu.dimension_semantics<parallel>], iteration_bounds = array<i64: 4, 1>, scalar_prefetch = 0 : i64, scratch_operands = 0 : i64, tpu.core_type = #tpu.core_type<tc>, window_params = [{transform_indices = @transform_0, window_bounds = array<i64: 2, 2, 256>}, {transform_indices = @transform_1, window_bounds = array<i64: 2, 2, 256>}, {transform_indices = @transform_2, window_bounds = array<i64: 2, 2, 256>}, {transform_indices = @transform_3, window_bounds = array<i64: 2, 2, 256>}]} {
    %c0 = arith.constant 0 : index
    %c0_0 = arith.constant 0 : index
    %c0_1 = arith.constant 0 : index
    %0 = vector.load %arg2[%c0, %c0_0, %c0_1] : memref<2x2x256xf32, #tpu.memory_space<vmem>>, vector<2x2x256xf32>
    %c0_2 = arith.constant 0 : index
    %c0_3 = arith.constant 0 : index
    %c0_4 = arith.constant 0 : index
    %1 = vector.load %arg3[%c0_2, %c0_3, %c0_4] : memref<2x2x256xf32, #tpu.memory_space<vmem>>, vector<2x2x256xf32>
    %c0_5 = arith.constant 0 : index
    %c0_6 = arith.constant 0 : index
    %c0_7 = arith.constant 0 : index
    %2 = vector.load %arg4[%c0_5, %c0_6, %c0_7] : memref<2x2x256xf32, #tpu.memory_space<vmem>>, vector<2x2x256xf32>
    %3 = vector.extract_strided_slice %0 {offsets = [0, 0, 0], sizes = [2, 1, 256], strides = [1, 1, 1]} : vector<2x2x256xf32> to vector<2x1x256xf32>
    %4 = vector.broadcast %3 : vector<2x1x256xf32> to vector<2x2x256xf32>
    %5 = arith.mulf %4, %1 : vector<2x2x256xf32>
    %cst = arith.constant dense<0.000000e+00> : vector<2x256xf32>
    %6 = vector.multi_reduction <add>, %5, %cst [0] : vector<2x2x256xf32> to vector<2x256xf32>
    %cst_8 = arith.constant 0.707106769 : f32
    %7 = vector.broadcast %cst_8 : f32 to vector<2x256xf32>
    %8 = arith.mulf %6, %7 : vector<2x256xf32>
    %cst_9 = arith.constant dense<0xFF800000> : vector<256xf32>
    %9 = vector.multi_reduction <maximumf>, %8, %cst_9 [0] : vector<2x256xf32> to vector<256xf32>
    %10 = vector.shape_cast %9 : vector<256xf32> to vector<1x256xf32>
    %11 = vector.broadcast %10 : vector<1x256xf32> to vector<2x256xf32>
    %12 = arith.subf %8, %11 : vector<2x256xf32>
    %13 = math.exp %12 : vector<2x256xf32>
    %cst_10 = arith.constant dense<0.000000e+00> : vector<256xf32>
    %14 = vector.multi_reduction <add>, %13, %cst_10 [0] : vector<2x256xf32> to vector<256xf32>
    %15 = vector.shape_cast %14 : vector<256xf32> to vector<1x256xf32>
    %16 = vector.broadcast %15 : vector<1x256xf32> to vector<2x256xf32>
    %17 = arith.divf %13, %16 : vector<2x256xf32>
    %18 = vector.shape_cast %17 : vector<2x256xf32> to vector<1x2x256xf32>
    %19 = vector.broadcast %18 : vector<1x2x256xf32> to vector<2x2x256xf32>
    %20 = arith.mulf %19, %2 : vector<2x2x256xf32>
    %cst_11 = arith.constant dense<0.000000e+00> : vector<2x256xf32>
    %21 = vector.multi_reduction <add>, %20, %cst_11 [1] : vector<2x2x256xf32> to vector<2x256xf32>
    %c0_12 = arith.constant 0 : index
    %c0_13 = arith.constant 0 : index
    %c0_14 = arith.constant 0 : index
    %22 = vector.load %arg5[%c0_12, %c0_13, %c0_14] : memref<2x2x256xf32, #tpu.memory_space<vmem>>, vector<2x1x256xf32>
    %23 = vector.shape_cast %22 : vector<2x1x256xf32> to vector<2x256xf32>
    %24 = vector.shape_cast %21 : vector<2x256xf32> to vector<2x1x256xf32>
    tpu.vector_store %arg5[%c0_12, %c0_13, %c0_14], %24 {strides = array<i32>} : memref<2x2x256xf32, #tpu.memory_space<vmem>>, vector<2x1x256xf32>,
    %25 = vector.extract_strided_slice %0 {offsets = [0, 1, 0], sizes = [2, 1, 256], strides = [1, 1, 1]} : vector<2x2x256xf32> to vector<2x1x256xf32>
    %26 = vector.broadcast %25 : vector<2x1x256xf32> to vector<2x2x256xf32>
    %27 = arith.mulf %26, %1 : vector<2x2x256xf32>
    %cst_15 = arith.constant dense<0.000000e+00> : vector<2x256xf32>
    %28 = vector.multi_reduction <add>, %27, %cst_15 [0] : vector<2x2x256xf32> to vector<2x256xf32>
    %cst_16 = arith.constant 0.707106769 : f32
    %29 = vector.broadcast %cst_16 : f32 to vector<2x256xf32>
    %30 = arith.mulf %28, %29 : vector<2x256xf32>
    %cst_17 = arith.constant dense<0xFF800000> : vector<256xf32>
    %31 = vector.multi_reduction <maximumf>, %30, %cst_17 [0] : vector<2x256xf32> to vector<256xf32>
    %32 = vector.shape_cast %31 : vector<256xf32> to vector<1x256xf32>
    %33 = vector.broadcast %32 : vector<1x256xf32> to vector<2x256xf32>
    %34 = arith.subf %30, %33 : vector<2x256xf32>
    %35 = math.exp %34 : vector<2x256xf32>
    %cst_18 = arith.constant dense<0.000000e+00> : vector<256xf32>
    %36 = vector.multi_reduction <add>, %35, %cst_18 [0] : vector<2x256xf32> to vector<256xf32>
    %37 = vector.shape_cast %36 : vector<256xf32> to vector<1x256xf32>
    %38 = vector.broadcast %37 : vector<1x256xf32> to vector<2x256xf32>
    %39 = arith.divf %35, %38 : vector<2x256xf32>
    %40 = vector.shape_cast %39 : vector<2x256xf32> to vector<1x2x256xf32>
    %41 = vector.broadcast %40 : vector<1x2x256xf32> to vector<2x2x256xf32>
    %42 = arith.mulf %41, %2 : vector<2x2x256xf32>
    %cst_19 = arith.constant dense<0.000000e+00> : vector<2x256xf32>
    %43 = vector.multi_reduction <add>, %42, %cst_19 [1] : vector<2x2x256xf32> to vector<2x256xf32>
    %c0_20 = arith.constant 0 : index
    %c1 = arith.constant 1 : index
    %c0_21 = arith.constant 0 : index
    %44 = vector.load %arg5[%c0_20, %c1, %c0_21] : memref<2x2x256xf32, #tpu.memory_space<vmem>>, vector<2x1x256xf32>
    %45 = vector.shape_cast %44 : vector<2x1x256xf32> to vector<2x256xf32>
    %46 = vector.shape_cast %43 : vector<2x256xf32> to vector<2x1x256xf32>
    tpu.vector_store %arg5[%c0_20, %c1, %c0_21], %46 {strides = array<i32>} : memref<2x2x256xf32, #tpu.memory_space<vmem>>, vector<2x1x256xf32>,
    return
  }
  func.func @transform_0(%arg0: i32, %arg1: i32) -> (i32, i32, i32) {
    %c0_i32 = arith.constant 0 : i32
    %c0_i32_0 = arith.constant 0 : i32
    return %arg0, %c0_i32, %arg1 : i32, i32, i32
  }
  func.func @transform_1(%arg0: i32, %arg1: i32) -> (i32, i32, i32) {
    %c0_i32 = arith.constant 0 : i32
    %c0_i32_0 = arith.constant 0 : i32
    return %arg0, %c0_i32, %arg1 : i32, i32, i32
  }
  func.func @transform_2(%arg0: i32, %arg1: i32) -> (i32, i32, i32) {
    %c0_i32 = arith.constant 0 : i32
    %c0_i32_0 = arith.constant 0 : i32
    return %arg0, %c0_i32, %arg1 : i32, i32, i32
  }
  func.func @transform_3(%arg0: i32, %arg1: i32) -> (i32, i32, i32) {
    %c0_i32 = arith.constant 0 : i32
    %c0_i32_0 = arith.constant 0 : i32
    return %arg0, %c0_i32, %arg1 : i32, i32, i32
  }
}

module attributes {stable_mosaic.version = 11 : i64} {
  func.func @_matmul_bias_kernel(%arg0: i32, %arg1: i32, %arg2: i32, %arg3: memref<8x128xf32, #tpu.memory_space<vmem>>, %arg4: memref<128x512xf32, #tpu.memory_space<vmem>>, %arg5: memref<8x1xf32, #tpu.memory_space<vmem>>, %arg6: memref<8x512xf32, #tpu.memory_space<vmem>>, %arg7: memref<8x512xf32, #tpu.memory_space<vmem>>) attributes {dimension_semantics = [#tpu.dimension_semantics<parallel>, #tpu.dimension_semantics<parallel>, #tpu.dimension_semantics<arbitrary>], iteration_bounds = array<i64: 1, 1, 1>, scalar_prefetch = 0 : i64, scratch_operands = 1 : i64, tpu.core_type = #tpu.core_type<tc>, window_params = [{transform_indices = @transform_0, window_bounds = array<i64: 8, 128>}, {transform_indices = @transform_1, window_bounds = array<i64: 128, 512>}, {transform_indices = @transform_2, window_bounds = array<i64: 8, 1>}, {transform_indices = @transform_3, window_bounds = array<i64: 8, 512>}]} {
    %c0_i32 = arith.constant 0 : i32
    %0 = arith.cmpi eq, %arg2, %c0_i32 : i32
    %1 = arith.extui %0 : i1 to i32
    %c0_i32_0 = arith.constant 0 : i32
    %2 = arith.cmpi ne, %1, %c0_i32_0 : i32
    scf.if %2 {
      %cst_10 = arith.constant 0.000000e+00 : f32
      %12 = vector.broadcast %cst_10 : f32 to vector<8x512xf32>
      %c0_11 = arith.constant 0 : index
      %c0_12 = arith.constant 0 : index
      %13 = vector.load %arg7[%c0_11, %c0_12] : memref<8x512xf32, #tpu.memory_space<vmem>>, vector<8x512xf32>
      tpu.vector_store %arg7[%c0_11, %c0_12], %12 {strides = array<i32>} : memref<8x512xf32, #tpu.memory_space<vmem>>, vector<8x512xf32>,
    } else {
    }
    %c0 = arith.constant 0 : index
    %c0_1 = arith.constant 0 : index
    %3 = vector.load %arg7[%c0, %c0_1] : memref<8x512xf32, #tpu.memory_space<vmem>>, vector<8x512xf32>
    %c0_2 = arith.constant 0 : index
    %c0_3 = arith.constant 0 : index
    %4 = vector.load %arg3[%c0_2, %c0_3] : memref<8x128xf32, #tpu.memory_space<vmem>>, vector<8x128xf32>
    %c0_4 = arith.constant 0 : index
    %c0_5 = arith.constant 0 : index
    %5 = vector.load %arg4[%c0_4, %c0_5] : memref<128x512xf32, #tpu.memory_space<vmem>>, vector<128x512xf32>
    %cst = arith.constant dense<0.000000e+00> : vector<8x512xf32>
    %6 = tpu.matmul %4, %5, %cst {dimension_numbers = #tpu.dot_dimension_numbers<[1], [0], [0], [1], [0, 0, 1, 1], [], []>} : vector<8x128xf32>, vector<128x512xf32>, vector<8x512xf32> -> vector<8x512xf32>
    %7 = arith.addf %3, %6 : vector<8x512xf32>
    %c0_6 = arith.constant 0 : index
    %c0_7 = arith.constant 0 : index
    %8 = vector.load %arg7[%c0_6, %c0_7] : memref<8x512xf32, #tpu.memory_space<vmem>>, vector<8x512xf32>
    tpu.vector_store %arg7[%c0_6, %c0_7], %7 {strides = array<i32>} : memref<8x512xf32, #tpu.memory_space<vmem>>, vector<8x512xf32>,
    %c0_i32_8 = arith.constant 0 : i32
    %9 = arith.cmpi eq, %arg2, %c0_i32_8 : i32
    %10 = arith.extui %9 : i1 to i32
    %c0_i32_9 = arith.constant 0 : i32
    %11 = arith.cmpi ne, %10, %c0_i32_9 : i32
    scf.if %11 {
      %c0_10 = arith.constant 0 : index
      %c0_11 = arith.constant 0 : index
      %12 = vector.load %arg7[%c0_10, %c0_11] : memref<8x512xf32, #tpu.memory_space<vmem>>, vector<8x512xf32>
      %c0_12 = arith.constant 0 : index
      %c0_13 = arith.constant 0 : index
      %13 = vector.load %arg5[%c0_12, %c0_13] : memref<8x1xf32, #tpu.memory_space<vmem>>, vector<8x1xf32>
      %14 = vector.broadcast %13 : vector<8x1xf32> to vector<8x512xf32>
      %15 = arith.addf %12, %14 : vector<8x512xf32>
      %c0_14 = arith.constant 0 : index
      %c0_15 = arith.constant 0 : index
      %16 = vector.load %arg6[%c0_14, %c0_15] : memref<8x512xf32, #tpu.memory_space<vmem>>, vector<8x512xf32>
      tpu.vector_store %arg6[%c0_14, %c0_15], %15 {strides = array<i32>} : memref<8x512xf32, #tpu.memory_space<vmem>>, vector<8x512xf32>,
    } else {
    }
    return
  }
  func.func @transform_0(%arg0: i32, %arg1: i32, %arg2: i32) -> (i32, i32) {
    %c0_i32 = arith.constant 0 : i32
    return %arg0, %arg2 : i32, i32
  }
  func.func @transform_1(%arg0: i32, %arg1: i32, %arg2: i32) -> (i32, i32) {
    %c0_i32 = arith.constant 0 : i32
    return %arg2, %arg1 : i32, i32
  }
  func.func @transform_2(%arg0: i32, %arg1: i32, %arg2: i32) -> (i32, i32) {
    %c0_i32 = arith.constant 0 : i32
    %c0_i32_0 = arith.constant 0 : i32
    return %arg0, %c0_i32 : i32, i32
  }
  func.func @transform_3(%arg0: i32, %arg1: i32, %arg2: i32) -> (i32, i32) {
    %c0_i32 = arith.constant 0 : i32
    return %arg0, %arg1 : i32, i32
  }
}

module attributes {stable_mosaic.version = 11 : i64} {
  func.func @_bn_apply_kernel(%arg0: i32, %arg1: memref<8x512xf32, #tpu.memory_space<vmem>>, %arg2: memref<8x1xf32, #tpu.memory_space<vmem>>, %arg3: memref<8x1xf32, #tpu.memory_space<vmem>>, %arg4: memref<8x1xf32, #tpu.memory_space<vmem>>, %arg5: memref<8x1xf32, #tpu.memory_space<vmem>>, %arg6: memref<8x512xf32, #tpu.memory_space<vmem>>) attributes {dimension_semantics = [#tpu.dimension_semantics<parallel>], iteration_bounds = array<i64: 1>, scalar_prefetch = 0 : i64, scratch_operands = 0 : i64, tpu.core_type = #tpu.core_type<tc>, window_params = [{transform_indices = @transform_0, window_bounds = array<i64: 8, 512>}, {pipeline_mode = #tpu.pipeline_mode<synchronous>, transform_indices = @transform_1, window_bounds = array<i64: 8, 1>}, {pipeline_mode = #tpu.pipeline_mode<synchronous>, transform_indices = @transform_2, window_bounds = array<i64: 8, 1>}, {pipeline_mode = #tpu.pipeline_mode<synchronous>, transform_indices = @transform_3, window_bounds = array<i64: 8, 1>}, {pipeline_mode = #tpu.pipeline_mode<synchronous>, transform_indices = @transform_4, window_bounds = array<i64: 8, 1>}, {transform_indices = @transform_5, window_bounds = array<i64: 8, 512>}]} {
    %c0 = arith.constant 0 : index
    %c0_0 = arith.constant 0 : index
    %0 = vector.load %arg1[%c0, %c0_0] : memref<8x512xf32, #tpu.memory_space<vmem>>, vector<8x512xf32>
    %c0_1 = arith.constant 0 : index
    %c0_2 = arith.constant 0 : index
    %1 = vector.load %arg2[%c0_1, %c0_2] : memref<8x1xf32, #tpu.memory_space<vmem>>, vector<8x1xf32>
    %2 = vector.broadcast %1 : vector<8x1xf32> to vector<8x512xf32>
    %3 = arith.subf %0, %2 : vector<8x512xf32>
    %c0_3 = arith.constant 0 : index
    %c0_4 = arith.constant 0 : index
    %4 = vector.load %arg3[%c0_3, %c0_4] : memref<8x1xf32, #tpu.memory_space<vmem>>, vector<8x1xf32>
    %c0_5 = arith.constant 0 : index
    %c0_6 = arith.constant 0 : index
    %5 = vector.load %arg4[%c0_5, %c0_6] : memref<8x1xf32, #tpu.memory_space<vmem>>, vector<8x1xf32>
    %6 = arith.mulf %4, %5 : vector<8x1xf32>
    %7 = vector.broadcast %6 : vector<8x1xf32> to vector<8x512xf32>
    %8 = arith.mulf %3, %7 : vector<8x512xf32>
    %c0_7 = arith.constant 0 : index
    %c0_8 = arith.constant 0 : index
    %9 = vector.load %arg5[%c0_7, %c0_8] : memref<8x1xf32, #tpu.memory_space<vmem>>, vector<8x1xf32>
    %10 = vector.broadcast %9 : vector<8x1xf32> to vector<8x512xf32>
    %11 = arith.addf %8, %10 : vector<8x512xf32>
    %c0_9 = arith.constant 0 : index
    %c0_10 = arith.constant 0 : index
    %12 = vector.load %arg6[%c0_9, %c0_10] : memref<8x512xf32, #tpu.memory_space<vmem>>, vector<8x512xf32>
    tpu.vector_store %arg6[%c0_9, %c0_10], %11 {strides = array<i32>} : memref<8x512xf32, #tpu.memory_space<vmem>>, vector<8x512xf32>,
    return
  }
  func.func @transform_0(%arg0: i32) -> (i32, i32) {
    %c0_i32 = arith.constant 0 : i32
    %c0_i32_0 = arith.constant 0 : i32
    return %c0_i32, %arg0 : i32, i32
  }
  func.func @transform_1(%arg0: i32) -> (i32, i32) {
    %c0_i32 = arith.constant 0 : i32
    %c0_i32_0 = arith.constant 0 : i32
    %c0_i32_1 = arith.constant 0 : i32
    return %c0_i32, %c0_i32_0 : i32, i32
  }
  func.func @transform_2(%arg0: i32) -> (i32, i32) {
    %c0_i32 = arith.constant 0 : i32
    %c0_i32_0 = arith.constant 0 : i32
    %c0_i32_1 = arith.constant 0 : i32
    return %c0_i32, %c0_i32_0 : i32, i32
  }
  func.func @transform_3(%arg0: i32) -> (i32, i32) {
    %c0_i32 = arith.constant 0 : i32
    %c0_i32_0 = arith.constant 0 : i32
    %c0_i32_1 = arith.constant 0 : i32
    return %c0_i32, %c0_i32_0 : i32, i32
  }
  func.func @transform_4(%arg0: i32) -> (i32, i32) {
    %c0_i32 = arith.constant 0 : i32
    %c0_i32_0 = arith.constant 0 : i32
    %c0_i32_1 = arith.constant 0 : i32
    return %c0_i32, %c0_i32_0 : i32, i32
  }
  func.func @transform_5(%arg0: i32) -> (i32, i32) {
    %c0_i32 = arith.constant 0 : i32
    %c0_i32_0 = arith.constant 0 : i32
    return %c0_i32, %arg0 : i32, i32
  }
}

module attributes {stable_mosaic.version = 11 : i64} {
  func.func @_bn_apply_kernel(%arg0: i32, %arg1: memref<8x512xf32, #tpu.memory_space<vmem>>, %arg2: memref<8x1xf32, #tpu.memory_space<vmem>>, %arg3: memref<8x1xf32, #tpu.memory_space<vmem>>, %arg4: memref<8x1xf32, #tpu.memory_space<vmem>>, %arg5: memref<8x1xf32, #tpu.memory_space<vmem>>, %arg6: memref<8x512xf32, #tpu.memory_space<vmem>>, %arg7: memref<8x512xf32, #tpu.memory_space<vmem>>) attributes {dimension_semantics = [#tpu.dimension_semantics<parallel>], iteration_bounds = array<i64: 1>, scalar_prefetch = 0 : i64, scratch_operands = 0 : i64, tpu.core_type = #tpu.core_type<tc>, window_params = [{transform_indices = @transform_0, window_bounds = array<i64: 8, 512>}, {pipeline_mode = #tpu.pipeline_mode<synchronous>, transform_indices = @transform_1, window_bounds = array<i64: 8, 1>}, {pipeline_mode = #tpu.pipeline_mode<synchronous>, transform_indices = @transform_2, window_bounds = array<i64: 8, 1>}, {pipeline_mode = #tpu.pipeline_mode<synchronous>, transform_indices = @transform_3, window_bounds = array<i64: 8, 1>}, {pipeline_mode = #tpu.pipeline_mode<synchronous>, transform_indices = @transform_4, window_bounds = array<i64: 8, 1>}, {transform_indices = @transform_5, window_bounds = array<i64: 8, 512>}, {transform_indices = @transform_6, window_bounds = array<i64: 8, 512>}]} {
    %c0 = arith.constant 0 : index
    %c0_0 = arith.constant 0 : index
    %0 = vector.load %arg1[%c0, %c0_0] : memref<8x512xf32, #tpu.memory_space<vmem>>, vector<8x512xf32>
    %c0_1 = arith.constant 0 : index
    %c0_2 = arith.constant 0 : index
    %1 = vector.load %arg2[%c0_1, %c0_2] : memref<8x1xf32, #tpu.memory_space<vmem>>, vector<8x1xf32>
    %2 = vector.broadcast %1 : vector<8x1xf32> to vector<8x512xf32>
    %3 = arith.subf %0, %2 : vector<8x512xf32>
    %c0_3 = arith.constant 0 : index
    %c0_4 = arith.constant 0 : index
    %4 = vector.load %arg3[%c0_3, %c0_4] : memref<8x1xf32, #tpu.memory_space<vmem>>, vector<8x1xf32>
    %c0_5 = arith.constant 0 : index
    %c0_6 = arith.constant 0 : index
    %5 = vector.load %arg4[%c0_5, %c0_6] : memref<8x1xf32, #tpu.memory_space<vmem>>, vector<8x1xf32>
    %6 = arith.mulf %4, %5 : vector<8x1xf32>
    %7 = vector.broadcast %6 : vector<8x1xf32> to vector<8x512xf32>
    %8 = arith.mulf %3, %7 : vector<8x512xf32>
    %c0_7 = arith.constant 0 : index
    %c0_8 = arith.constant 0 : index
    %9 = vector.load %arg5[%c0_7, %c0_8] : memref<8x1xf32, #tpu.memory_space<vmem>>, vector<8x1xf32>
    %10 = vector.broadcast %9 : vector<8x1xf32> to vector<8x512xf32>
    %11 = arith.addf %8, %10 : vector<8x512xf32>
    %c0_9 = arith.constant 0 : index
    %c0_10 = arith.constant 0 : index
    %12 = vector.load %arg6[%c0_9, %c0_10] : memref<8x512xf32, #tpu.memory_space<vmem>>, vector<8x512xf32>
    %13 = arith.addf %11, %12 : vector<8x512xf32>
    %c0_11 = arith.constant 0 : index
    %c0_12 = arith.constant 0 : index
    %14 = vector.load %arg7[%c0_11, %c0_12] : memref<8x512xf32, #tpu.memory_space<vmem>>, vector<8x512xf32>
    tpu.vector_store %arg7[%c0_11, %c0_12], %13 {strides = array<i32>} : memref<8x512xf32, #tpu.memory_space<vmem>>, vector<8x512xf32>,
    return
  }
  func.func @transform_0(%arg0: i32) -> (i32, i32) {
    %c0_i32 = arith.constant 0 : i32
    %c0_i32_0 = arith.constant 0 : i32
    return %c0_i32, %arg0 : i32, i32
  }
  func.func @transform_1(%arg0: i32) -> (i32, i32) {
    %c0_i32 = arith.constant 0 : i32
    %c0_i32_0 = arith.constant 0 : i32
    %c0_i32_1 = arith.constant 0 : i32
    return %c0_i32, %c0_i32_0 : i32, i32
  }
  func.func @transform_2(%arg0: i32) -> (i32, i32) {
    %c0_i32 = arith.constant 0 : i32
    %c0_i32_0 = arith.constant 0 : i32
    %c0_i32_1 = arith.constant 0 : i32
    return %c0_i32, %c0_i32_0 : i32, i32
  }
  func.func @transform_3(%arg0: i32) -> (i32, i32) {
    %c0_i32 = arith.constant 0 : i32
    %c0_i32_0 = arith.constant 0 : i32
    %c0_i32_1 = arith.constant 0 : i32
    return %c0_i32, %c0_i32_0 : i32, i32
  }
  func.func @transform_4(%arg0: i32) -> (i32, i32) {
    %c0_i32 = arith.constant 0 : i32
    %c0_i32_0 = arith.constant 0 : i32
    %c0_i32_1 = arith.constant 0 : i32
    return %c0_i32, %c0_i32_0 : i32, i32
  }
  func.func @transform_5(%arg0: i32) -> (i32, i32) {
    %c0_i32 = arith.constant 0 : i32
    %c0_i32_0 = arith.constant 0 : i32
    return %c0_i32, %arg0 : i32, i32
  }
  func.func @transform_6(%arg0: i32) -> (i32, i32) {
    %c0_i32 = arith.constant 0 : i32
    %c0_i32_0 = arith.constant 0 : i32
    return %c0_i32, %arg0 : i32, i32
  }
}

module attributes {stable_mosaic.version = 11 : i64} {
  func.func @_matmul_bias_kernel(%arg0: i32, %arg1: i32, %arg2: i32, %arg3: memref<8x128xf32, #tpu.memory_space<vmem>>, %arg4: memref<128x128xf32, #tpu.memory_space<vmem>>, %arg5: memref<8x1xf32, #tpu.memory_space<vmem>>, %arg6: memref<8x128xf32, #tpu.memory_space<vmem>>, %arg7: memref<8x128xf32, #tpu.memory_space<vmem>>) attributes {dimension_semantics = [#tpu.dimension_semantics<parallel>, #tpu.dimension_semantics<parallel>, #tpu.dimension_semantics<arbitrary>], iteration_bounds = array<i64: 1, 1, 1>, scalar_prefetch = 0 : i64, scratch_operands = 1 : i64, tpu.core_type = #tpu.core_type<tc>, window_params = [{transform_indices = @transform_0, window_bounds = array<i64: 8, 128>}, {transform_indices = @transform_1, window_bounds = array<i64: 128, 128>}, {transform_indices = @transform_2, window_bounds = array<i64: 8, 1>}, {transform_indices = @transform_3, window_bounds = array<i64: 8, 128>}]} {
    %c0_i32 = arith.constant 0 : i32
    %0 = arith.cmpi eq, %arg2, %c0_i32 : i32
    %1 = arith.extui %0 : i1 to i32
    %c0_i32_0 = arith.constant 0 : i32
    %2 = arith.cmpi ne, %1, %c0_i32_0 : i32
    scf.if %2 {
      %cst_10 = arith.constant 0.000000e+00 : f32
      %12 = vector.broadcast %cst_10 : f32 to vector<8x128xf32>
      %c0_11 = arith.constant 0 : index
      %c0_12 = arith.constant 0 : index
      %13 = vector.load %arg7[%c0_11, %c0_12] : memref<8x128xf32, #tpu.memory_space<vmem>>, vector<8x128xf32>
      tpu.vector_store %arg7[%c0_11, %c0_12], %12 {strides = array<i32>} : memref<8x128xf32, #tpu.memory_space<vmem>>, vector<8x128xf32>,
    } else {
    }
    %c0 = arith.constant 0 : index
    %c0_1 = arith.constant 0 : index
    %3 = vector.load %arg7[%c0, %c0_1] : memref<8x128xf32, #tpu.memory_space<vmem>>, vector<8x128xf32>
    %c0_2 = arith.constant 0 : index
    %c0_3 = arith.constant 0 : index
    %4 = vector.load %arg3[%c0_2, %c0_3] : memref<8x128xf32, #tpu.memory_space<vmem>>, vector<8x128xf32>
    %c0_4 = arith.constant 0 : index
    %c0_5 = arith.constant 0 : index
    %5 = vector.load %arg4[%c0_4, %c0_5] : memref<128x128xf32, #tpu.memory_space<vmem>>, vector<128x128xf32>
    %cst = arith.constant dense<0.000000e+00> : vector<8x128xf32>
    %6 = tpu.matmul %4, %5, %cst {dimension_numbers = #tpu.dot_dimension_numbers<[1], [0], [0], [1], [0, 0, 1, 1], [], []>} : vector<8x128xf32>, vector<128x128xf32>, vector<8x128xf32> -> vector<8x128xf32>
    %7 = arith.addf %3, %6 : vector<8x128xf32>
    %c0_6 = arith.constant 0 : index
    %c0_7 = arith.constant 0 : index
    %8 = vector.load %arg7[%c0_6, %c0_7] : memref<8x128xf32, #tpu.memory_space<vmem>>, vector<8x128xf32>
    tpu.vector_store %arg7[%c0_6, %c0_7], %7 {strides = array<i32>} : memref<8x128xf32, #tpu.memory_space<vmem>>, vector<8x128xf32>,
    %c0_i32_8 = arith.constant 0 : i32
    %9 = arith.cmpi eq, %arg2, %c0_i32_8 : i32
    %10 = arith.extui %9 : i1 to i32
    %c0_i32_9 = arith.constant 0 : i32
    %11 = arith.cmpi ne, %10, %c0_i32_9 : i32
    scf.if %11 {
      %c0_10 = arith.constant 0 : index
      %c0_11 = arith.constant 0 : index
      %12 = vector.load %arg7[%c0_10, %c0_11] : memref<8x128xf32, #tpu.memory_space<vmem>>, vector<8x128xf32>
      %c0_12 = arith.constant 0 : index
      %c0_13 = arith.constant 0 : index
      %13 = vector.load %arg5[%c0_12, %c0_13] : memref<8x1xf32, #tpu.memory_space<vmem>>, vector<8x1xf32>
      %14 = vector.broadcast %13 : vector<8x1xf32> to vector<8x128xf32>
      %15 = arith.addf %12, %14 : vector<8x128xf32>
      %c0_14 = arith.constant 0 : index
      %c0_15 = arith.constant 0 : index
      %16 = vector.load %arg6[%c0_14, %c0_15] : memref<8x128xf32, #tpu.memory_space<vmem>>, vector<8x128xf32>
      tpu.vector_store %arg6[%c0_14, %c0_15], %15 {strides = array<i32>} : memref<8x128xf32, #tpu.memory_space<vmem>>, vector<8x128xf32>,
    } else {
    }
    return
  }
  func.func @transform_0(%arg0: i32, %arg1: i32, %arg2: i32) -> (i32, i32) {
    %c0_i32 = arith.constant 0 : i32
    return %arg0, %arg2 : i32, i32
  }
  func.func @transform_1(%arg0: i32, %arg1: i32, %arg2: i32) -> (i32, i32) {
    %c0_i32 = arith.constant 0 : i32
    return %arg2, %arg1 : i32, i32
  }
  func.func @transform_2(%arg0: i32, %arg1: i32, %arg2: i32) -> (i32, i32) {
    %c0_i32 = arith.constant 0 : i32
    %c0_i32_0 = arith.constant 0 : i32
    return %arg0, %c0_i32 : i32, i32
  }
  func.func @transform_3(%arg0: i32, %arg1: i32, %arg2: i32) -> (i32, i32) {
    %c0_i32 = arith.constant 0 : i32
    return %arg0, %arg1 : i32, i32
  }
}

</mosaic_0001>

<bundles_post_ra>
// kernel: block_forward.16
= control target key start
LH: loop header
LB: loop body
LE: loop exit
PB: predicated region body
PF: predicated region fallthrough
CT: control target
= control target key end

     0   :  { %vm14_vm0 = vcmask 7168   ;;  %v66_v3 = vmov 0.0   ;;  %s106_s0 = inlined_call_operand.vmem [shape: f32[8,512], index: 0, kind: input, shape index: {}]   ;;  %s107_s1 = inlined_call_operand.vmem [shape: f32[8,1], index: 1, kind: output, shape index: {0}]   ;;  %s108_s2 = inlined_call_operand.vmem [shape: f32[8,1], index: 2, kind: output, shape index: {1}]  }
   0x1   :  { %v17_v0 = vld [vmem:[%s106_s0] sm:$0xff]  ;;  %v18_v1 = vld [vmem:[%s106_s0 + $0x8] sm:$0xff]  ;;  %v19_v2 = vld [vmem:[%s106_s0 + $0x10] sm:$0xff]  ;;  %15 = vst.msk [vmem:[#allocation2] sm:$0xff] %vm14_vm0, %v66_v3 }
   0x2   :  { %16 = vst.msk [vmem:[#allocation3] sm:$0xff] %vm14_vm0, %v66_v3  ;;  %v22_v4 = vadd.f32 %v18_v1, %v17_v0  ;;  %v31_v5 = vmul.f32 %v17_v0, %v17_v0  ;;  %v32_v6 = vmul.f32 %v18_v1, %v18_v1  ;;  %v33_v7 = vmul.f32 %v19_v2, %v19_v2  ;;  %v20_v8 = vld [vmem:[%s106_s0 + $0x18] sm:$0xff] }
   0x3   :  { %v34_v10 = vmul.f32 %v20_v8, %v20_v8 }
   0x4   :  { %v23_v9 = vadd.f32 %v22_v4, %v19_v2  ;;  %v35_v11 = vadd.f32 %v32_v6, %v31_v5 }
   0x6   :  { %v24_v12 = vadd.f32 %v23_v9, %v20_v8  ;;  %v36_v13 = vadd.f32 %v35_v11, %v33_v7 }
   0x8   :  { %25 = vadd.xlane.f32.xlu0 %v24_v12  ;;  %v37_v14 = vadd.f32 %v36_v13, %v34_v10  ;;  %v21_v15 = vld [vmem:[#allocation2] sm:$0xff] }
   0x9   :  { %v30_v18 = vld [vmem:[#allocation3] sm:$0xff] }
   0xc   :  { %38 = vadd.xlane.f32.xlu0 %v37_v14 }
  0x95   :  { %v26_v16 = vpop.xlane.xlu0 %25 }
  0x96   :  { %v27_v17 = vadd.f32 %v26_v16, %v21_v15 }
  0x98   :  { %29 = vst.msk [vmem:[#allocation2] sm:$0xff] %vm14_vm0, %v27_v17 }
  0x99   :  { %v39_v19 = vpop.xlane.xlu0 %38 }
  0x9a   :  { %v40_v20 = vadd.f32 %v39_v19, %v30_v18 }
  0x9c   :  { %41 = vst.msk [vmem:[#allocation3] sm:$0xff] %vm14_vm0, %v40_v20 }
  0x9f   :  { %v45_v21 = vld [vmem:[#allocation2] sm:$0xff] }
  0xa0   :  { %v46_v22 = vmul.f32 0.001953125, %v45_v21 }
  0xa2   :  { %51 = vst.msk [vmem:[%s107_s1] sm:$0xff] %vm14_vm0, %v46_v22  ;;  %v49_v24 = vmul.f32 %v46_v22, %v46_v22 }
  0xa3   :  { %v47_v23 = vld [vmem:[#allocation3] sm:$0xff] }
  0xa4   :  { %v48_v25 = vmul.f32 0.001953125, %v47_v23 }
  0xa6   :  { %v50_v26 = vsub.f32 %v48_v25, %v49_v24 }
  0xa8   :  { %v52_v27 = vadd.f32 1e-05, %v50_v26 }
  0xaa   :  { %64 = vrsqrt.f32 %v52_v27 }
  0xb4   :  { %v65_v28 = vpop.eup %64 }
  0xb5   :  { %54 = vst.msk [vmem:[%s108_s2] sm:$0xff] %vm14_vm0, %v65_v28 }

// kernel: block_forward.15
= control target key start
LH: loop header
LB: loop body
LE: loop exit
PB: predicated region body
PF: predicated region fallthrough
CT: control target
= control target key end

     0   :  { %v207_v0 = vmov 0.0|0.0   ;;  %vm208_vm0 = vmmov 0   ;;  %v209_v4 = vmov 0.0   ;;  %v210_v7 = vmov 0   ;;  %s288_s1 = inlined_call_operand.vmem [shape: f32[128,128], index: 1, kind: input, shape index: {}]   ;;  %s289_s2 = inlined_call_operand.vmem [shape: f32[8,1], index: 2, kind: input, shape index: {}]   ;;  %s290_s0 = inlined_call_operand.vmem [shape: f32[8,128], index: 0, kind: input, shape index: {}]   ;;  %s291_s3 = inlined_call_operand.vmem [shape: f32[8,128], index: 3, kind: output, shape index: {}]  }
   0x1   :  { %178 = vmatprep.subr.bf16.mxu0 %v207_v0  ;;  %v21_v1 = vld [vmem:[%s288_s1] sm:$0xff]  ;;  %v22_v2 = vld [vmem:[%s288_s1 + $0x8] sm:$0xff]  ;;  %v23_v3 = vld [vmem:[%s288_s1 + $0x10] sm:$0xff]  ;;  %175 = vmatprep.mubr.msk.f32.mxu0 %vm208_vm0, %v209_v4 }
   0x2   :  { %v179_v5 = vpack.c.bf16 %v22_v2, %v21_v1  ;;  %v24_v6 = vld [vmem:[%s288_s1 + $0x18] sm:$0xff]  ;;  %206 = vset.pattern.permute.xlu0 %v210_v7  ;;  %v25_v9 = vld [vmem:[%s288_s1 + $0x20] sm:$0xff]  ;;  %v26_v10 = vld [vmem:[%s288_s1 + $0x28] sm:$0xff] }
   0x3   :  { %v182_v8 = vpack.c.bf16 %v24_v6, %v23_v3  ;;  %v113_v11 = vld [vmem:[%s289_s2] sm:$0xff]  ;;  %v185_v12 = vpack.c.bf16 %v26_v10, %v25_v9  ;;  %v27_v13 = vld [vmem:[%s288_s1 + $0x30] sm:$0xff]  ;;  %v28_v14 = vld [vmem:[%s288_s1 + $0x38] sm:$0xff] }
   0x4   :  { %180 = vmatpush3.bf16.msra.mxu0 %v179_v5  ;;  %116 = vperm.xlu0 %206, %v113_v11   ;;  %v188_v15 = vpack.c.bf16 %v28_v14, %v27_v13  ;;  %v29_v16 = vld [vmem:[%s288_s1 + $0x40] sm:$0xff]  ;;  %v30_v17 = vld [vmem:[%s288_s1 + $0x48] sm:$0xff]  ;;  %v31_v19 = vld [vmem:[%s288_s1 + $0x50] sm:$0xff] }
   0x5   :  { %181 = vmatprep.subr.bf16.mxu0 %v207_v0  ;;  %v191_v18 = vpack.c.bf16 %v30_v17, %v29_v16  ;;  %v32_v20 = vld [vmem:[%s288_s1 + $0x58] sm:$0xff]  ;;  %v33_v22 = vld [vmem:[%s288_s1 + $0x60] sm:$0xff]  ;;  %v34_v23 = vld [vmem:[%s288_s1 + $0x68] sm:$0xff] }
   0x6   :  { %v194_v21 = vpack.c.bf16 %v32_v20, %v31_v19  ;;  %v197_v24 = vpack.c.bf16 %v34_v23, %v33_v22  ;;  %v35_v25 = vld [vmem:[%s288_s1 + $0x70] sm:$0xff]  ;;  %v36_v26 = vld [vmem:[%s288_s1 + $0x78] sm:$0xff]  ;;  %v20_v28 = vld [vmem:[%s290_s0] sm:$0xff] }
   0x7   :  { %v200_v27 = vpack.c.bf16 %v36_v26, %v35_v25 }
   0x8   :  { %183 = vmatpush3.bf16.msra.mxu0 %v182_v8 }
   0x9   :  { %184 = vmatprep.subr.bf16.mxu0 %v207_v0 }
   0xc   :  { %186 = vmatpush3.bf16.msra.mxu0 %v185_v12 }
   0xd   :  { %187 = vmatprep.subr.bf16.mxu0 %v207_v0 }
  0x10   :  { %189 = vmatpush3.bf16.msra.mxu0 %v188_v15 }
  0x11   :  { %190 = vmatprep.subr.bf16.mxu0 %v207_v0 }
  0x14   :  { %192 = vmatpush3.bf16.msra.mxu0 %v191_v18 }
  0x15   :  { %193 = vmatprep.subr.bf16.mxu0 %v207_v0 }
  0x18   :  { %195 = vmatpush3.bf16.msra.mxu0 %v194_v21 }
  0x19   :  { %196 = vmatprep.subr.bf16.mxu0 %v207_v0 }
  0x1c   :  { %198 = vmatpush3.bf16.msra.mxu0 %v197_v24 }
  0x1d   :  { %199 = vmatprep.subr.bf16.mxu0 %v207_v0 }
  0x20   :  { %201 = vmatpush3.bf16.msra.mxu0 %v200_v27 }
  0x23   :  { %176 = vmatmul.mubr.f32.vlgmr.msra.gmra.mrb[0].mxu0 %v20_v28 }
  0x83   :  { %v117_v29 = vpop.permute.xlu0 %116 }
  0xf6   :  { %v103_v30 = vpop.f32.mrb[0].mxu0 }
  0xf7   :  { %v119_v31 = vadd.f32 %v117_v29, %v103_v30  ;;  %v177_v32 = vpop.f32.mrb[1].mxu0 }
  0xf9   :  { %v120_v33 = vmax.f32 %v119_v31, 0.0 }
  0xfb   :  { %121 = vst [vmem:[%s291_s3] sm:$0xff] %v120_v33 }

// kernel: block_forward.14
= control target key start
LH: loop header
LB: loop body
LE: loop exit
PB: predicated region body
PF: predicated region fallthrough
CT: control target
= control target key end

     0   :  { %v337_v3 = vmov 0.0   ;;  %v338_v8 = vmov 0   ;;  %s569_s1 = inlined_call_operand.vmem [shape: f32[128,512], index: 1, kind: input, shape index: {}]   ;;  %s570_s2 = inlined_call_operand.vmem [shape: f32[8,1], index: 2, kind: input, shape index: {}]   ;;  %s571_s0 = inlined_call_operand.vmem [shape: f32[8,128], index: 0, kind: input, shape index: {}]   ;;  %s572_s3 = inlined_call_operand.vmem [shape: f32[8,512], index: 3, kind: output, shape index: {}]  }
   0x1   :  { %v28_v0 = vld [vmem:[%s569_s1 + $0x8] sm:$0xff]  ;;  %v30_v2 = vld [vmem:[%s569_s1 + $0x18] sm:$0xff]  ;;  %155 = vmatprep.mubr.f32.mxu0 %v337_v3  ;;  %226 = vmatprep.mubr.f32.mxu1 %v337_v3  ;;  %v27_v6 = vld [vmem:[%s569_s1] sm:$0xff] }
   0x2   :  { %v32_v1 = vld [vmem:[%s569_s1 + $0x28] sm:$0xff]  ;;  %v34_v5 = vld [vmem:[%s569_s1 + $0x38] sm:$0xff]  ;;  %v31_v7 = vld [vmem:[%s569_s1 + $0x20] sm:$0xff]  ;;  %336 = vset.pattern.permute.xlu0 %v338_v8 }
   0x3   :  { %v270_v4 = vpack.c.bf16 %v32_v1, %v28_v0  ;;  %v302_v9 = vpack.c.bf16 %v34_v5, %v30_v2  ;;  %v272_v10 = vpack.c.bf16 %v31_v7, %v27_v6  ;;  %v29_v11 = vld [vmem:[%s569_s1 + $0x10] sm:$0xff]  ;;  %v36_v13 = vld [vmem:[%s569_s1 + $0x48] sm:$0xff]  ;;  %v38_v16 = vld [vmem:[%s569_s1 + $0x58] sm:$0xff] }
   0x4   :  { %v33_v12 = vld [vmem:[%s569_s1 + $0x30] sm:$0xff]  ;;  %v40_v15 = vld [vmem:[%s569_s1 + $0x68] sm:$0xff]  ;;  %v42_v17 = vld [vmem:[%s569_s1 + $0x78] sm:$0xff] }
   0x5   :  { %271 = vmatprep.subr.bf16.mxu0 %v270_v4  ;;  %v304_v14 = vpack.c.bf16 %v33_v12, %v29_v11  ;;  %303 = vmatprep.subr.bf16.mxu1 %v302_v9  ;;  %v274_v18 = vpack.c.bf16 %v40_v15, %v36_v13  ;;  %v306_v19 = vpack.c.bf16 %v42_v17, %v38_v16  ;;  %v35_v20 = vld [vmem:[%s569_s1 + $0x40] sm:$0xff]  ;;  %v37_v22 = vld [vmem:[%s569_s1 + $0x50] sm:$0xff]  ;;  %v44_v25 = vld [vmem:[%s569_s1 + $0x88] sm:$0xff] }
   0x6   :  { %273 = vmatpush1.bf16.msra.mxu0 %v272_v10  ;;  %v39_v21 = vld [vmem:[%s569_s1 + $0x60] sm:$0xff]  ;;  %v41_v24 = vld [vmem:[%s569_s1 + $0x70] sm:$0xff]  ;;  %v48_v26 = vld [vmem:[%s569_s1 + $0xa8] sm:$0xff] }
   0x7   :  { %305 = vmatpush1.bf16.msra.mxu1 %v304_v14  ;;  %v276_v23 = vpack.c.bf16 %v39_v21, %v35_v20  ;;  %275 = vmatprep.subr.bf16.mxu0 %v274_v18  ;;  %v308_v27 = vpack.c.bf16 %v41_v24, %v37_v22  ;;  %v278_v28 = vpack.c.bf16 %v48_v26, %v44_v25  ;;  %v46_v29 = vld [vmem:[%s569_s1 + $0x98] sm:$0xff]  ;;  %v43_v31 = vld [vmem:[%s569_s1 + $0x80] sm:$0xff]  ;;  %v45_v34 = vld [vmem:[%s569_s1 + $0x90] sm:$0xff] }
   0x8   :  { %307 = vmatprep.subr.bf16.mxu1 %v306_v19  ;;  %v50_v30 = vld [vmem:[%s569_s1 + $0xb8] sm:$0xff]  ;;  %v47_v33 = vld [vmem:[%s569_s1 + $0xa0] sm:$0xff]  ;;  %v49_v35 = vld [vmem:[%s569_s1 + $0xb0] sm:$0xff] }
   0x9   :  { %v310_v32 = vpack.c.bf16 %v50_v30, %v46_v29  ;;  %v280_v36 = vpack.c.bf16 %v47_v33, %v43_v31  ;;  %v52_v37 = vld [vmem:[%s569_s1 + $0xc8] sm:$0xff]  ;;  %v54_v39 = vld [vmem:[%s569_s1 + $0xd8] sm:$0xff]  ;;  %v312_v40 = vpack.c.bf16 %v49_v35, %v45_v34  ;;  %v51_v43 = vld [vmem:[%s569_s1 + $0xc0] sm:$0xff] }
   0xa   :  { %277 = vmatpush1.bf16.msra.mxu0 %v276_v23  ;;  %v56_v38 = vld [vmem:[%s569_s1 + $0xe8] sm:$0xff]  ;;  %v58_v42 = vld [vmem:[%s569_s1 + $0xf8] sm:$0xff]  ;;  %v55_v44 = vld [vmem:[%s569_s1 + $0xe0] sm:$0xff] }
   0xb   :  { %309 = vmatpush1.bf16.msra.mxu1 %v308_v27  ;;  %279 = vmatprep.subr.bf16.mxu0 %v278_v28  ;;  %v282_v41 = vpack.c.bf16 %v56_v38, %v52_v37  ;;  %v314_v45 = vpack.c.bf16 %v58_v42, %v54_v39  ;;  %v53_v46 = vld [vmem:[%s569_s1 + $0xd0] sm:$0xff]  ;;  %v60_v48 = vld [vmem:[%s569_s1 + $0x108] sm:$0xff]  ;;  %v62_v50 = vld [vmem:[%s569_s1 + $0x118] sm:$0xff]  ;;  %v284_v52 = vpack.c.bf16 %v55_v44, %v51_v43 }
   0xc   :  { %311 = vmatprep.subr.bf16.mxu1 %v310_v32  ;;  %v57_v47 = vld [vmem:[%s569_s1 + $0xf0] sm:$0xff]  ;;  %v64_v49 = vld [vmem:[%s569_s1 + $0x128] sm:$0xff]  ;;  %v66_v51 = vld [vmem:[%s569_s1 + $0x138] sm:$0xff] }
   0xd   :  { %v316_v53 = vpack.c.bf16 %v57_v47, %v53_v46  ;;  %v286_v54 = vpack.c.bf16 %v64_v49, %v60_v48  ;;  %v59_v55 = vld [vmem:[%s569_s1 + $0x100] sm:$0xff]  ;;  %v61_v57 = vld [vmem:[%s569_s1 + $0x110] sm:$0xff]  ;;  %v318_v58 = vpack.c.bf16 %v66_v51, %v62_v50  ;;  %v68_v60 = vld [vmem:[%s569_s1 + $0x148] sm:$0xff] }
   0xe   :  { %281 = vmatpush1.bf16.msra.mxu0 %v280_v36  ;;  %v63_v56 = vld [vmem:[%s569_s1 + $0x120] sm:$0xff]  ;;  %v65_v59 = vld [vmem:[%s569_s1 + $0x130] sm:$0xff]  ;;  %v72_v61 = vld [vmem:[%s569_s1 + $0x168] sm:$0xff] }
   0xf   :  { %313 = vmatpush1.bf16.msra.mxu1 %v312_v40  ;;  %283 = vmatprep.subr.bf16.mxu0 %v282_v41  ;;  %v70_v62 = vld [vmem:[%s569_s1 + $0x158] sm:$0xff]  ;;  %v288_v0 = vpack.c.bf16 %v63_v56, %v59_v55  ;;  %v320_v1 = vpack.c.bf16 %v65_v59, %v61_v57  ;;  %v290_v2 = vpack.c.bf16 %v72_v61, %v68_v60  ;;  %v67_v3 = vld [vmem:[%s569_s1 + $0x140] sm:$0xff]  ;;  %v69_v5 = vld [vmem:[%s569_s1 + $0x150] sm:$0xff] }
  0x10   :  { %315 = vmatprep.subr.bf16.mxu1 %v314_v45  ;;  %v74_v63 = vld [vmem:[%s569_s1 + $0x178] sm:$0xff]  ;;  %v71_v4 = vld [vmem:[%s569_s1 + $0x160] sm:$0xff]  ;;  %v73_v7 = vld [vmem:[%s569_s1 + $0x170] sm:$0xff] }
  0x11   :  { %v322_v6 = vpack.c.bf16 %v74_v63, %v70_v62  ;;  %v76_v8 = vld [vmem:[%s569_s1 + $0x188] sm:$0xff]  ;;  %v78_v10 = vld [vmem:[%s569_s1 + $0x198] sm:$0xff]  ;;  %v292_v12 = vpack.c.bf16 %v71_v4, %v67_v3  ;;  %v75_v13 = vld [vmem:[%s569_s1 + $0x180] sm:$0xff]  ;;  %v324_v14 = vpack.c.bf16 %v73_v7, %v69_v5 }
  0x12   :  { %285 = vmatpush1.bf16.msra.mxu0 %v284_v52  ;;  %v80_v9 = vld [vmem:[%s569_s1 + $0x1a8] sm:$0xff]  ;;  %v82_v11 = vld [vmem:[%s569_s1 + $0x1b8] sm:$0xff]  ;;  %v79_v16 = vld [vmem:[%s569_s1 + $0x1a0] sm:$0xff] }
  0x13   :  { %317 = vmatpush1.bf16.msra.mxu1 %v316_v53  ;;  %287 = vmatprep.subr.bf16.mxu0 %v286_v54  ;;  %v294_v15 = vpack.c.bf16 %v80_v9, %v76_v8  ;;  %v77_v17 = vld [vmem:[%s569_s1 + $0x190] sm:$0xff]  ;;  %v248_v18 = vld [vmem:[%s570_s2] sm:$0xff]  ;;  %v326_v19 = vpack.c.bf16 %v82_v11, %v78_v10  ;;  %v84_v21 = vld [vmem:[%s569_s1 + $0x1c8] sm:$0xff]  ;;  %v296_v25 = vpack.c.bf16 %v79_v16, %v75_v13 }
  0x14   :  { %319 = vmatprep.subr.bf16.mxu1 %v318_v58  ;;  %v81_v20 = vld [vmem:[%s569_s1 + $0x1b0] sm:$0xff]  ;;  %v88_v22 = vld [vmem:[%s569_s1 + $0x1e8] sm:$0xff]  ;;  %251 = vperm.xlu0 %336, %v248_v18   ;;  %v86_v23 = vld [vmem:[%s569_s1 + $0x1d8] sm:$0xff] }
  0x15   :  { %v90_v24 = vld [vmem:[%s569_s1 + $0x1f8] sm:$0xff]  ;;  %v328_v26 = vpack.c.bf16 %v81_v20, %v77_v17  ;;  %v298_v27 = vpack.c.bf16 %v88_v22, %v84_v21  ;;  %v83_v28 = vld [vmem:[%s569_s1 + $0x1c0] sm:$0xff]  ;;  %v85_v31 = vld [vmem:[%s569_s1 + $0x1d0] sm:$0xff] }
  0x16   :  { %289 = vmatpush1.bf16.msra.mxu0 %v288_v0  ;;  %v87_v29 = vld [vmem:[%s569_s1 + $0x1e0] sm:$0xff]  ;;  %v330_v30 = vpack.c.bf16 %v90_v24, %v86_v23  ;;  %v89_v32 = vld [vmem:[%s569_s1 + $0x1f0] sm:$0xff] }
  0x17   :  { %321 = vmatpush1.bf16.msra.mxu1 %v320_v1  ;;  %291 = vmatprep.subr.bf16.mxu0 %v290_v2  ;;  %v300_v33 = vpack.c.bf16 %v87_v29, %v83_v28  ;;  %v332_v34 = vpack.c.bf16 %v89_v32, %v85_v31  ;;  %v26_v35 = vld [vmem:[%s571_s0] sm:$0xff] }
  0x18   :  { %323 = vmatprep.subr.bf16.mxu1 %v322_v6 }
  0x1a   :  { %293 = vmatpush1.bf16.msra.mxu0 %v292_v12 }
  0x1b   :  { %325 = vmatpush1.bf16.msra.mxu1 %v324_v14  ;;  %295 = vmatprep.subr.bf16.mxu0 %v294_v15 }
  0x1c   :  { %327 = vmatprep.subr.bf16.mxu1 %v326_v19 }
  0x1e   :  { %297 = vmatpush1.bf16.msra.mxu0 %v296_v25 }
  0x1f   :  { %329 = vmatpush1.bf16.msra.mxu1 %v328_v26  ;;  %299 = vmatprep.subr.bf16.mxu0 %v298_v27 }
  0x20   :  { %331 = vmatprep.subr.bf16.mxu1 %v330_v30 }
  0x22   :  { %301 = vmatpush1.bf16.msra.mxu0 %v300_v33 }
  0x23   :  { %333 = vmatpush1.bf16.msra.mxu1 %v332_v34 }
  0x25   :  { %156 = vmatmul.mubr.f32.vlgmr.msra.gmra.mrb[0].mxu0 %v26_v35 }
  0x26   :  { %227 = vmatmul.mubr.f32.vlgmr.msra.gmra.mrb[0].mxu1 %v26_v35 }
  0x93   :  { %v252_v36 = vpop.permute.xlu0 %251 }
  0xf8   :  { %v157_v37 = vpop.f32.mrb[0].mxu0 }
  0xf9   :  { %v254_v38 = vadd.f32 %v252_v36, %v157_v37  ;;  %v228_v39 = vpop.f32.mrb[0].mxu1  ;;  %v159_v40 = vpop.f32.mrb[1].mxu0 }
  0xfa   :  { %v256_v41 = vadd.f32 %v252_v36, %v228_v39  ;;  %v255_v42 = vadd.f32 %v252_v36, %v159_v40  ;;  %v230_v43 = vpop.f32.mrb[1].mxu1 }
  0xfb   :  { %v258_v44 = vmax.f32 %v254_v38, 0.0  ;;  %v257_v45 = vadd.f32 %v252_v36, %v230_v43 }
  0xfc   :  { %v260_v46 = vmax.f32 %v256_v41, 0.0  ;;  %v259_v47 = vmax.f32 %v255_v42, 0.0 }
  0xfd   :  { %262 = vst [vmem:[%s572_s3] sm:$0xff] %v258_v44  ;;  %v261_v48 = vmax.f32 %v257_v45, 0.0 }
  0xfe   :  { %264 = vst [vmem:[%s572_s3 + $0x10] sm:$0xff] %v260_v46  ;;  %263 = vst [vmem:[%s572_s3 + $0x8] sm:$0xff] %v259_v47 }
  0xff   :  { %265 = vst [vmem:[%s572_s3 + $0x18] sm:$0xff] %v261_v48 }

// kernel: squeeze.3
= control target key start
LH: loop header
LB: loop body
LE: loop exit
PB: predicated region body
PF: predicated region fallthrough
CT: control target
= control target key end

     0   :  { %s234_s0 = inlined_call_operand.vmem [shape: f32[8,512], index: 0, kind: input, shape index: {}]   ;;  %s235_s1 = inlined_call_operand.vmem [shape: f32[8,2,256], index: 1, kind: output, shape index: {}]  }
   0x1   :  { %v2_v0 = vld [vmem:[%s234_s0] sm:$0xff]   ;;  %v146_v1 = vld [vmem:[%s234_s0 + $0x8] sm:$0xff]   ;;  %v147_v2 = vld [vmem:[%s234_s0 + $0x10] sm:$0xff]  }
   0x2   :  { %3 = vst [vmem:[#allocation0] ss:$16 sm:$0x3] %v2_v0   ;;  %4 = vst [vmem:[#allocation0] ss:$16 sm:$0xc] %v2_v0  }
   0x3   :  { %5 = vst [vmem:[#allocation0] ss:$16 sm:$0x30] %v2_v0   ;;  %6 = vst [vmem:[#allocation0] ss:$16 sm:$0xc0] %v2_v0  }
   0x4   :  { %10 = vst [vmem:[#allocation0 + $0x8] ss:$16 sm:$0x3] %v146_v1   ;;  %12 = vst [vmem:[#allocation0 + $0x8] ss:$16 sm:$0xc] %v146_v1  }
   0x5   :  { %14 = vst [vmem:[#allocation0 + $0x8] ss:$16 sm:$0x30] %v146_v1   ;;  %16 = vst [vmem:[#allocation0 + $0x8] ss:$16 sm:$0xc0] %v146_v1  }
   0x6   :  { %20 = vst [vmem:[#allocation0 + $0x1] ss:$16 sm:$0x3] %v147_v2   ;;  %22 = vst [vmem:[#allocation0 + $0x1] ss:$16 sm:$0xc] %v147_v2  }
   0x7   :  { %24 = vst [vmem:[#allocation0 + $0x1] ss:$16 sm:$0x30] %v147_v2   ;;  %26 = vst [vmem:[#allocation0 + $0x1] ss:$16 sm:$0xc0] %v147_v2  }
   0x8   :  { %v148_v3 = vld [vmem:[%s234_s0 + $0x18] sm:$0xff]  }
   0x9   :  { %30 = vst [vmem:[#allocation0 + $0x9] ss:$16 sm:$0x3] %v148_v3   ;;  %32 = vst [vmem:[#allocation0 + $0x9] ss:$16 sm:$0xc] %v148_v3  }
   0xa   :  { %34 = vst [vmem:[#allocation0 + $0x9] ss:$16 sm:$0x30] %v148_v3   ;;  %36 = vst [vmem:[#allocation0 + $0x9] ss:$16 sm:$0xc0] %v148_v3  }
   0xd   :  { %v40_v4 = vld [vmem:[#allocation0] sm:$0x3]  ;;  %v49_v5 = vld [vmem:[#allocation0 + $0x10] sm:$0x3] }
   0xe   :  { %v61_v6 = vld [vmem:[#allocation0 + $0x20] sm:$0x3]  ;;  %42 = vst [vmem:[%s235_s1] sm:$0x3] %v40_v4  ;;  %150 = vst [vmem:[%s235_s1 + $0x4] sm:$0x3] %v49_v5 }
   0xf   :  { %152 = vst [vmem:[%s235_s1 + $0x8] sm:$0x3] %v61_v6  ;;  %v73_v10 = vld [vmem:[#allocation0 + $0x30] sm:$0x3]  ;;  %v85_v12 = vld [vmem:[#allocation0 + $0x40] sm:$0x3] }
  0x10   :  { %v44_v7 = vld [vmem:[#allocation0 + $0x8] sm:$0x3]  ;;  %v55_v8 = vld [vmem:[#allocation0 + $0x18] sm:$0x3]  ;;  %154 = vst [vmem:[%s235_s1 + $0xc] sm:$0x3] %v73_v10 }
  0x11   :  { %v67_v9 = vld [vmem:[#allocation0 + $0x28] sm:$0x3]  ;;  %149 = vst [vmem:[%s235_s1 + $0x2] sm:$0x3] %v44_v7  ;;  %151 = vst [vmem:[%s235_s1 + $0x6] sm:$0x3] %v55_v8 }
  0x12   :  { %153 = vst [vmem:[%s235_s1 + $0xa] sm:$0x3] %v67_v9  ;;  %v79_v11 = vld [vmem:[#allocation0 + $0x38] sm:$0x3]  ;;  %156 = vst [vmem:[%s235_s1 + $0x10] sm:$0x3] %v85_v12 }
  0x13   :  { %155 = vst [vmem:[%s235_s1 + $0xe] sm:$0x3] %v79_v11  ;;  %v91_v13 = vld [vmem:[#allocation0 + $0x48] sm:$0x3]  ;;  %v97_v14 = vld [vmem:[#allocation0 + $0x50] sm:$0x3] }
  0x14   :  { %v103_v15 = vld [vmem:[#allocation0 + $0x58] sm:$0x3]  ;;  %157 = vst [vmem:[%s235_s1 + $0x12] sm:$0x3] %v91_v13  ;;  %158 = vst [vmem:[%s235_s1 + $0x14] sm:$0x3] %v97_v14 }
  0x15   :  { %159 = vst [vmem:[%s235_s1 + $0x16] sm:$0x3] %v103_v15  ;;  %v109_v16 = vld [vmem:[#allocation0 + $0x60] sm:$0x3]  ;;  %v115_v17 = vld [vmem:[#allocation0 + $0x68] sm:$0x3] }
  0x16   :  { %v121_v18 = vld [vmem:[#allocation0 + $0x70] sm:$0x3]  ;;  %160 = vst [vmem:[%s235_s1 + $0x18] sm:$0x3] %v109_v16  ;;  %161 = vst [vmem:[%s235_s1 + $0x1a] sm:$0x3] %v115_v17 }
  0x17   :  { %162 = vst [vmem:[%s235_s1 + $0x1c] sm:$0x3] %v121_v18  ;;  %v127_v19 = vld [vmem:[#allocation0 + $0x78] sm:$0x3] }
  0x18   :  { %163 = vst [vmem:[%s235_s1 + $0x1e] sm:$0x3] %v127_v19 }

// kernel: block_forward.17
= control target key start
LH: loop header
LB: loop body
LE: loop exit
PB: predicated region body
PF: predicated region fallthrough
CT: control target
= control target key end

     0   :  { %s513_s21 = smov 0   ;;  %s515_s22 = smov 0   ;;  %s566_s0 = inlined_call_operand.vmem [shape: f32[8,512], index: 0, kind: input, shape index: {}]   ;;  %s567_s1 = inlined_call_operand.vmem [shape: f32[8,1], index: 1, kind: input, shape index: {}]   ;;  %s568_s2 = inlined_call_operand.vmem [shape: f32[8,1], index: 2, kind: input, shape index: {}]   ;;  %s569_s3 = inlined_call_operand.vmem [shape: f32[8,1], index: 3, kind: input, shape index: {}]   ;;  %s570_s4 = inlined_call_operand.vmem [shape: f32[8,1], index: 4, kind: input, shape index: {}]   ;;  %s571_s5 = inlined_call_operand.vmem [shape: f32[2,8,1], index: 5, kind: input, shape index: {}]   ;;  %s572_s6 = inlined_call_operand.vmem [shape: f32[8,512], index: 6, kind: output, shape index: {}]  }
   0x1   :  { %s517_s23 = smov 0  }
   0x2 LB: > { %s28_s24 = sadd.s32 1, %s471_s22  ;;  %p418_p0 = scmp.ge.s32.totalorder %s475_s23, 1  ;;  %s475_s23 = sphi %s517_s23, %s16_s23   ;;  %s471_s22 = sphi %s515_s22, %s574_s22   ;;  %s467_s21 = sphi %s513_s21, %s573_s21  }
   0x3   : > { %p30_p1 = scmp.ge.s32.totalorder %s28_s24, 2  ;;  %p240_p2 = scmp.lt.s32.totalorder %s475_s23, 3 }
   0x5   : > { %s576_s24 = smov (%p30_p1, %s28_s24), 0  ;;  %p241_p3 = pnand %p418_p0, %p240_p2 }
   0x6   : > { %v298_v0 = vld [vmem:[%s567_s1] sm:$0xff] (!%p241_p3)  ;;  %p284_p4 = scmp.lt.s32.totalorder (!%p241_p3), %s467_s21, 1  ;;  %v477_v3 = vmov (!%p241_p3), 0   ;;  %s419_s14 = sshll.u32 (!%p241_p3), %s467_s21, 1 }
   0x7   : > { %244 = sbr.rel (%p241_p3) target bundleno = 150 (0x96), region = 44  ;;  %v316_v1 = vld [vmem:[%s570_s4] sm:$0xff] (!%p241_p3)  ;;  %451 = vset.pattern.permute.xlu0 (!%p241_p3), %v477_v3  ;;  %452 = vset.pattern.permute.xlu1 (!%p241_p3), %v477_v3  ;;  %p278_p5 = scmp.lt.s32.totalorder (!%p241_p3), %s419_s14, 3 }
   0x8   : > { %v306_v2 = vld [vmem:[%s568_s2] sm:$0xff] (!%p241_p3)  ;;  %301 = vperm.xlu0 (!%p241_p3), %451, %v298_v0   ;;  %319 = vperm.xlu1 (!%p241_p3), %452, %v316_v1  }
   0x9   : > { %v307_v4 = vld [vmem:[%s569_s3] sm:$0xff] (!%p241_p3) }
   0xa   : > { %v308_v5 = vmul.f32 (!%p241_p3), %v307_v4, %v306_v2 }
   0xc   : > { %311 = vperm.xlu0 (!%p241_p3), %451, %v308_v5  }
   0xe   : > { %s285_s9 = scalar_select %p284_p4, %s467_s21, 1 }
   0xf   : > { %s578_s14 = smov (!%p278_p5, %s419_s14), 3 }
  0x10   : > { %s421_s10 = sshll.u32 %s285_s9, 3  ;;  %s420_s15 = sshll.u32 %s578_s14, 3 }
  0x11   : > { %s287_s13 = scalar_lea.vmem %s571_s5, %s421_s10  ;;  %s281_s18 = scalar_lea.vmem %s566_s0, %s420_s15 }
  0x12   : > { %v324_v6 = vld [vmem:[%s287_s13] sm:$0xff]  ;;  %v297_v9 = vld [vmem:[%s281_s18 + $0x8] sm:$0xff]  ;;  %s293_s21 = scalar_lea.vmem %s572_s6, %s420_s15 }
  0x13   : > { %327 = vperm.xlu1 %452, %v324_v6   ;;  %v296_v8 = vld [vmem:[%s281_s18] sm:$0xff] }
  0x87   : > { %v302_v7 = vpop.permute.xlu0 %301  ;;  %v320_v10 = vpop.permute.xlu1 %319 }
  0x88   : > { %v304_v11 = vsub.f32 %v296_v8, %v302_v7  ;;  %v305_v12 = vsub.f32 %v297_v9, %v302_v7 }
  0x8b   : > { %v312_v13 = vpop.permute.xlu0 %311 }
  0x8c   : > { %v314_v14 = vmul.f32 %v312_v13, %v304_v11  ;;  %v315_v15 = vmul.f32 %v312_v13, %v305_v12 }
  0x8e   : > { %v322_v16 = vadd.f32 %v320_v10, %v314_v14  ;;  %v323_v17 = vadd.f32 %v320_v10, %v315_v15 }
  0x92   : > { %v328_v18 = vpop.permute.xlu1 %327 }
  0x93   : > { %v330_v19 = vadd.f32 %v328_v18, %v322_v16  ;;  %v331_v20 = vadd.f32 %v328_v18, %v323_v17 }
  0x95   : > { %332 = vst [vmem:[%s293_s21] sm:$0xff] %v330_v19  ;;  %333 = vst [vmem:[%s293_s21 + $0x8] sm:$0xff] %v331_v20 }
  0x96 PF: > { %s16_s23 = sadd.s32 1, %s475_s23   ;;  %s573_s21 = smov %s471_s22 }
  0x97   : > { %p13_p6 = scmp.ge.s32.totalorder %s16_s23, 4   ;;  %s574_s22 = smov %s576_s24 }
  0x99   :  { %15 = sbr.rel (!%p13_p6) target bundleno = 2 (0x2), region = 77 }

// kernel: block_forward.18
= control target key start
LH: loop header
LB: loop body
LE: loop exit
PB: predicated region body
PF: predicated region fallthrough
CT: control target
= control target key end

     0   :  { %v428_v3 = vmov 0.0   ;;  %v429_v8 = vmov 0   ;;  %s702_s1 = inlined_call_operand.vmem [shape: f32[128,512], index: 1, kind: input, shape index: {}]   ;;  %s703_s2 = inlined_call_operand.vmem [shape: f32[24,1], index: 2, kind: input, shape index: {}]   ;;  %s704_s0 = inlined_call_operand.vmem [shape: f32[24,128], index: 0, kind: input, shape index: {}]   ;;  %s705_s3 = inlined_call_operand.vmem [shape: f32[24,512], index: 3, kind: output, shape index: {}]  }
   0x1   :  { %v46_v0 = vld [vmem:[%s702_s1 + $0x8] sm:$0xff]  ;;  %v48_v2 = vld [vmem:[%s702_s1 + $0x18] sm:$0xff]  ;;  %173 = vmatprep.mubr.f32.mxu0 %v428_v3  ;;  %256 = vmatprep.mubr.f32.mxu1 %v428_v3  ;;  %v45_v6 = vld [vmem:[%s702_s1] sm:$0xff] }
   0x2   :  { %v50_v1 = vld [vmem:[%s702_s1 + $0x28] sm:$0xff]  ;;  %v52_v5 = vld [vmem:[%s702_s1 + $0x38] sm:$0xff]  ;;  %v49_v7 = vld [vmem:[%s702_s1 + $0x20] sm:$0xff]  ;;  %426 = vset.pattern.permute.xlu0 %v429_v8  ;;  %427 = vset.pattern.permute.xlu1 %v429_v8 }
   0x3   :  { %v360_v4 = vpack.c.bf16 %v50_v1, %v46_v0  ;;  %v392_v9 = vpack.c.bf16 %v52_v5, %v48_v2  ;;  %v362_v10 = vpack.c.bf16 %v49_v7, %v45_v6  ;;  %v47_v11 = vld [vmem:[%s702_s1 + $0x10] sm:$0xff]  ;;  %v54_v13 = vld [vmem:[%s702_s1 + $0x48] sm:$0xff]  ;;  %v56_v16 = vld [vmem:[%s702_s1 + $0x58] sm:$0xff] }
   0x4   :  { %v51_v12 = vld [vmem:[%s702_s1 + $0x30] sm:$0xff]  ;;  %v58_v15 = vld [vmem:[%s702_s1 + $0x68] sm:$0xff]  ;;  %v60_v17 = vld [vmem:[%s702_s1 + $0x78] sm:$0xff] }
   0x5   :  { %361 = vmatprep.subr.bf16.mxu0 %v360_v4  ;;  %v394_v14 = vpack.c.bf16 %v51_v12, %v47_v11  ;;  %393 = vmatprep.subr.bf16.mxu1 %v392_v9  ;;  %v364_v18 = vpack.c.bf16 %v58_v15, %v54_v13  ;;  %v396_v19 = vpack.c.bf16 %v60_v17, %v56_v16  ;;  %v53_v20 = vld [vmem:[%s702_s1 + $0x40] sm:$0xff]  ;;  %v55_v22 = vld [vmem:[%s702_s1 + $0x50] sm:$0xff]  ;;  %v62_v25 = vld [vmem:[%s702_s1 + $0x88] sm:$0xff] }
   0x6   :  { %363 = vmatpush1.bf16.msra.mxu0 %v362_v10  ;;  %v57_v21 = vld [vmem:[%s702_s1 + $0x60] sm:$0xff]  ;;  %v59_v24 = vld [vmem:[%s702_s1 + $0x70] sm:$0xff]  ;;  %v66_v26 = vld [vmem:[%s702_s1 + $0xa8] sm:$0xff] }
   0x7   :  { %395 = vmatpush1.bf16.msra.mxu1 %v394_v14  ;;  %v366_v23 = vpack.c.bf16 %v57_v21, %v53_v20  ;;  %365 = vmatprep.subr.bf16.mxu0 %v364_v18  ;;  %v398_v27 = vpack.c.bf16 %v59_v24, %v55_v22  ;;  %v368_v28 = vpack.c.bf16 %v66_v26, %v62_v25  ;;  %v64_v29 = vld [vmem:[%s702_s1 + $0x98] sm:$0xff]  ;;  %v61_v31 = vld [vmem:[%s702_s1 + $0x80] sm:$0xff]  ;;  %v63_v34 = vld [vmem:[%s702_s1 + $0x90] sm:$0xff] }
   0x8   :  { %397 = vmatprep.subr.bf16.mxu1 %v396_v19  ;;  %v68_v30 = vld [vmem:[%s702_s1 + $0xb8] sm:$0xff]  ;;  %v65_v33 = vld [vmem:[%s702_s1 + $0xa0] sm:$0xff]  ;;  %v67_v35 = vld [vmem:[%s702_s1 + $0xb0] sm:$0xff] }
   0x9   :  { %v400_v32 = vpack.c.bf16 %v68_v30, %v64_v29  ;;  %v370_v36 = vpack.c.bf16 %v65_v33, %v61_v31  ;;  %v70_v37 = vld [vmem:[%s702_s1 + $0xc8] sm:$0xff]  ;;  %v72_v39 = vld [vmem:[%s702_s1 + $0xd8] sm:$0xff]  ;;  %v402_v40 = vpack.c.bf16 %v67_v35, %v63_v34  ;;  %v69_v43 = vld [vmem:[%s702_s1 + $0xc0] sm:$0xff] }
   0xa   :  { %367 = vmatpush1.bf16.msra.mxu0 %v366_v23  ;;  %v74_v38 = vld [vmem:[%s702_s1 + $0xe8] sm:$0xff]  ;;  %v76_v42 = vld [vmem:[%s702_s1 + $0xf8] sm:$0xff]  ;;  %v73_v44 = vld [vmem:[%s702_s1 + $0xe0] sm:$0xff] }
   0xb   :  { %399 = vmatpush1.bf16.msra.mxu1 %v398_v27  ;;  %369 = vmatprep.subr.bf16.mxu0 %v368_v28  ;;  %v372_v41 = vpack.c.bf16 %v74_v38, %v70_v37  ;;  %v404_v45 = vpack.c.bf16 %v76_v42, %v72_v39  ;;  %v71_v46 = vld [vmem:[%s702_s1 + $0xd0] sm:$0xff]  ;;  %v78_v48 = vld [vmem:[%s702_s1 + $0x108] sm:$0xff]  ;;  %v80_v50 = vld [vmem:[%s702_s1 + $0x118] sm:$0xff]  ;;  %v374_v52 = vpack.c.bf16 %v73_v44, %v69_v43 }
   0xc   :  { %401 = vmatprep.subr.bf16.mxu1 %v400_v32  ;;  %v75_v47 = vld [vmem:[%s702_s1 + $0xf0] sm:$0xff]  ;;  %v82_v49 = vld [vmem:[%s702_s1 + $0x128] sm:$0xff]  ;;  %v84_v51 = vld [vmem:[%s702_s1 + $0x138] sm:$0xff] }
   0xd   :  { %v406_v53 = vpack.c.bf16 %v75_v47, %v71_v46  ;;  %v376_v54 = vpack.c.bf16 %v82_v49, %v78_v48  ;;  %v77_v55 = vld [vmem:[%s702_s1 + $0x100] sm:$0xff]  ;;  %v79_v57 = vld [vmem:[%s702_s1 + $0x110] sm:$0xff]  ;;  %v408_v58 = vpack.c.bf16 %v84_v51, %v80_v50  ;;  %v86_v60 = vld [vmem:[%s702_s1 + $0x148] sm:$0xff] }
   0xe   :  { %371 = vmatpush1.bf16.msra.mxu0 %v370_v36  ;;  %v81_v56 = vld [vmem:[%s702_s1 + $0x120] sm:$0xff]  ;;  %v83_v59 = vld [vmem:[%s702_s1 + $0x130] sm:$0xff]  ;;  %v90_v61 = vld [vmem:[%s702_s1 + $0x168] sm:$0xff] }
   0xf   :  { %403 = vmatpush1.bf16.msra.mxu1 %v402_v40  ;;  %373 = vmatprep.subr.bf16.mxu0 %v372_v41  ;;  %v88_v62 = vld [vmem:[%s702_s1 + $0x158] sm:$0xff]  ;;  %v378_v0 = vpack.c.bf16 %v81_v56, %v77_v55  ;;  %v410_v1 = vpack.c.bf16 %v83_v59, %v79_v57  ;;  %v380_v2 = vpack.c.bf16 %v90_v61, %v86_v60  ;;  %v85_v4 = vld [vmem:[%s702_s1 + $0x140] sm:$0xff]  ;;  %v87_v6 = vld [vmem:[%s702_s1 + $0x150] sm:$0xff] }
  0x10   :  { %405 = vmatprep.subr.bf16.mxu1 %v404_v45  ;;  %v92_v63 = vld [vmem:[%s702_s1 + $0x178] sm:$0xff]  ;;  %v89_v5 = vld [vmem:[%s702_s1 + $0x160] sm:$0xff]  ;;  %v91_v8 = vld [vmem:[%s702_s1 + $0x170] sm:$0xff] }
  0x11   :  { %v412_v7 = vpack.c.bf16 %v92_v63, %v88_v62  ;;  %v94_v9 = vld [vmem:[%s702_s1 + $0x188] sm:$0xff]  ;;  %v96_v11 = vld [vmem:[%s702_s1 + $0x198] sm:$0xff]  ;;  %v382_v13 = vpack.c.bf16 %v89_v5, %v85_v4  ;;  %v93_v14 = vld [vmem:[%s702_s1 + $0x180] sm:$0xff]  ;;  %v414_v15 = vpack.c.bf16 %v91_v8, %v87_v6 }
  0x12   :  { %375 = vmatpush1.bf16.msra.mxu0 %v374_v52  ;;  %v98_v10 = vld [vmem:[%s702_s1 + $0x1a8] sm:$0xff]  ;;  %v100_v12 = vld [vmem:[%s702_s1 + $0x1b8] sm:$0xff]  ;;  %v97_v17 = vld [vmem:[%s702_s1 + $0x1a0] sm:$0xff] }
  0x13   :  { %407 = vmatpush1.bf16.msra.mxu1 %v406_v53  ;;  %377 = vmatprep.subr.bf16.mxu0 %v376_v54  ;;  %v384_v16 = vpack.c.bf16 %v98_v10, %v94_v9  ;;  %v95_v18 = vld [vmem:[%s702_s1 + $0x190] sm:$0xff]  ;;  %v416_v20 = vpack.c.bf16 %v100_v12, %v96_v11  ;;  %v102_v21 = vld [vmem:[%s702_s1 + $0x1c8] sm:$0xff]  ;;  %v314_v23 = vld [vmem:[%s703_s2] sm:$0xff]  ;;  %v386_v27 = vpack.c.bf16 %v97_v17, %v93_v14 }
  0x14   :  { %409 = vmatprep.subr.bf16.mxu1 %v408_v58  ;;  %v99_v19 = vld [vmem:[%s702_s1 + $0x1b0] sm:$0xff]  ;;  %v106_v22 = vld [vmem:[%s702_s1 + $0x1e8] sm:$0xff]  ;;  %v104_v24 = vld [vmem:[%s702_s1 + $0x1d8] sm:$0xff]  ;;  %319 = vperm.xlu0 %426, %v314_v23  }
  0x15   :  { %v108_v25 = vld [vmem:[%s702_s1 + $0x1f8] sm:$0xff]  ;;  %v316_v26 = vld [vmem:[%s703_s2 + $0x10] sm:$0xff]  ;;  %v315_v28 = vld [vmem:[%s703_s2 + $0x8] sm:$0xff]  ;;  %v418_v29 = vpack.c.bf16 %v99_v19, %v95_v18  ;;  %v388_v30 = vpack.c.bf16 %v106_v22, %v102_v21 }
  0x16   :  { %379 = vmatpush1.bf16.msra.mxu0 %v378_v0  ;;  %329 = vperm.xlu1 %427, %v316_v26   ;;  %v101_v31 = vld [vmem:[%s702_s1 + $0x1c0] sm:$0xff]  ;;  %v420_v33 = vpack.c.bf16 %v108_v25, %v104_v24  ;;  %v103_v34 = vld [vmem:[%s702_s1 + $0x1d0] sm:$0xff]  ;;  %v43_v39 = vld [vmem:[%s704_s0 + $0x8] sm:$0xff] }
  0x17   :  { %411 = vmatpush1.bf16.msra.mxu1 %v410_v1  ;;  %381 = vmatprep.subr.bf16.mxu0 %v380_v2  ;;  %v105_v32 = vld [vmem:[%s702_s1 + $0x1e0] sm:$0xff]  ;;  %v107_v35 = vld [vmem:[%s702_s1 + $0x1f0] sm:$0xff] }
  0x18   :  { %413 = vmatprep.subr.bf16.mxu1 %v412_v7  ;;  %324 = vperm.xlu0 %426, %v315_v28   ;;  %v390_v36 = vpack.c.bf16 %v105_v32, %v101_v31  ;;  %v422_v37 = vpack.c.bf16 %v107_v35, %v103_v34  ;;  %v42_v38 = vld [vmem:[%s704_s0] sm:$0xff]  ;;  %v44_v40 = vld [vmem:[%s704_s0 + $0x10] sm:$0xff] }
  0x1a   :  { %383 = vmatpush1.bf16.msra.mxu0 %v382_v13 }
  0x1b   :  { %415 = vmatpush1.bf16.msra.mxu1 %v414_v15  ;;  %385 = vmatprep.subr.bf16.mxu0 %v384_v16 }
  0x1c   :  { %417 = vmatprep.subr.bf16.mxu1 %v416_v20 }
  0x1e   :  { %387 = vmatpush1.bf16.msra.mxu0 %v386_v27 }
  0x1f   :  { %419 = vmatpush1.bf16.msra.mxu1 %v418_v29  ;;  %389 = vmatprep.subr.bf16.mxu0 %v388_v30 }
  0x20   :  { %421 = vmatprep.subr.bf16.mxu1 %v420_v33 }
  0x22   :  { %391 = vmatpush1.bf16.msra.mxu0 %v390_v36 }
  0x23   :  { %423 = vmatpush1.bf16.msra.mxu1 %v422_v37 }
  0x25   :  { %174 = vmatmul.mubr.f32.vlgmr.msra.gmra.mrb[0].mxu0 %v42_v38 }
  0x26   :  { %257 = vmatmul.mubr.f32.vlgmr.msra.gmra.mrb[0].mxu1 %v42_v38  ;;  %179 = vmatprep.mubr.f32.mxu0 %v428_v3 }
  0x27   :  { %262 = vmatprep.mubr.f32.mxu1 %v428_v3 }
  0x29   :  { %180 = vmatmul.mubr.f32.gmra.mrb[2].mxu0 %v43_v39 }
  0x2a   :  { %263 = vmatmul.mubr.f32.gmra.mrb[2].mxu1 %v43_v39  ;;  %185 = vmatprep.mubr.f32.mxu0 %v428_v3 }
  0x2b   :  { %268 = vmatprep.mubr.f32.mxu1 %v428_v3 }
  0x2d   :  { %186 = vmatmul.mubr.f32.gmra.mrb[4].mxu0 %v44_v40 }
  0x2e   :  { %269 = vmatmul.mubr.f32.gmra.mrb[4].mxu1 %v44_v40 }
  0x93   :  { %v320_v41 = vpop.permute.xlu0 %319 }
  0x95   :  { %v330_v57 = vpop.permute.xlu1 %329 }
  0x97   :  { %v325_v49 = vpop.permute.xlu0 %324 }
  0xf8   :  { %v175_v42 = vpop.f32.mrb[0].mxu0 }
  0xf9   :  { %v332_v43 = vadd.f32 %v320_v41, %v175_v42  ;;  %v258_v44 = vpop.f32.mrb[0].mxu1  ;;  %v177_v45 = vpop.f32.mrb[1].mxu0 }
  0xfa   :  { %v334_v46 = vadd.f32 %v320_v41, %v258_v44  ;;  %v333_v47 = vadd.f32 %v320_v41, %v177_v45  ;;  %v260_v48 = vpop.f32.mrb[1].mxu1 }
  0xfb   :  { %344 = vst [vmem:[%s705_s3] sm:$0xff] %v332_v43  ;;  %v335_v50 = vadd.f32 %v320_v41, %v260_v48 }
  0xfc   :  { %346 = vst [vmem:[%s705_s3 + $0x10] sm:$0xff] %v334_v46  ;;  %345 = vst [vmem:[%s705_s3 + $0x8] sm:$0xff] %v333_v47  ;;  %v181_v3 = vpop.f32.mrb[2].mxu0 }
  0xfd   :  { %347 = vst [vmem:[%s705_s3 + $0x18] sm:$0xff] %v335_v50  ;;  %v336_v51 = vadd.f32 %v325_v49, %v181_v3  ;;  %v264_v52 = vpop.f32.mrb[2].mxu1  ;;  %v183_v53 = vpop.f32.mrb[3].mxu0 }
  0xfe   :  { %v338_v54 = vadd.f32 %v325_v49, %v264_v52  ;;  %v337_v55 = vadd.f32 %v325_v49, %v183_v53  ;;  %v266_v56 = vpop.f32.mrb[3].mxu1 }
  0xff   :  { %348 = vst [vmem:[%s705_s3 + $0x20] sm:$0xff] %v336_v51  ;;  %v339_v58 = vadd.f32 %v325_v49, %v266_v56 }
 0x100   :  { %350 = vst [vmem:[%s705_s3 + $0x30] sm:$0xff] %v338_v54  ;;  %349 = vst [vmem:[%s705_s3 + $0x28] sm:$0xff] %v337_v55  ;;  %v187_v59 = vpop.f32.mrb[4].mxu0 }
 0x101   :  { %351 = vst [vmem:[%s705_s3 + $0x38] sm:$0xff] %v339_v58  ;;  %v340_v60 = vadd.f32 %v330_v57, %v187_v59  ;;  %v270_v61 = vpop.f32.mrb[4].mxu1  ;;  %v189_v62 = vpop.f32.mrb[5].mxu0 }
 0x102   :  { %v342_v63 = vadd.f32 %v330_v57, %v270_v61  ;;  %v341_v0 = vadd.f32 %v330_v57, %v189_v62  ;;  %v272_v1 = vpop.f32.mrb[5].mxu1 }
 0x103   :  { %352 = vst [vmem:[%s705_s3 + $0x40] sm:$0xff] %v340_v60  ;;  %v343_v2 = vadd.f32 %v330_v57, %v272_v1 }
 0x104   :  { %354 = vst [vmem:[%s705_s3 + $0x50] sm:$0xff] %v342_v63  ;;  %353 = vst [vmem:[%s705_s3 + $0x48] sm:$0xff] %v341_v0 }
 0x105   :  { %355 = vst [vmem:[%s705_s3 + $0x58] sm:$0xff] %v343_v2 }

// kernel: block_forward.19
= control target key start
LH: loop header
LB: loop body
LE: loop exit
PB: predicated region body
PF: predicated region fallthrough
CT: control target
= control target key end

     0   :  { %s914_s12 = smov 0   ;;  %s916_s13 = smov 0   ;;  %s992_s0 = inlined_call_operand.vmem [shape: f32[8,2,256], index: 0, kind: input, shape index: {}]   ;;  %s993_s1 = inlined_call_operand.vmem [shape: f32[8,2,256], index: 1, kind: input, shape index: {}]   ;;  %s994_s2 = inlined_call_operand.vmem [shape: f32[8,2,256], index: 2, kind: input, shape index: {}]   ;;  %s995_s3 = inlined_call_operand.vmem [shape: f32[8,2,256], index: 3, kind: output, shape index: {}]  }
   0x1   :  { %s918_s14 = smov 0  }
   0x2 LB: > { %s25_s15 = sadd.s32 1, %s887_s13  ;;  %p802_p0 = scmp.ge.s32.totalorder %s891_s14, 1  ;;  %s891_s14 = sphi %s918_s14, %s13_s14   ;;  %s887_s13 = sphi %s916_s13, %s997_s13   ;;  %s883_s12 = sphi %s914_s12, %s996_s12  }
   0x3   : > { %p27_p1 = scmp.ge.s32.totalorder %s25_s15, 4  ;;  %p198_p2 = scmp.lt.s32.totalorder %s891_s14, 5 }
   0x5   : > { %s999_s15 = smov (%p27_p1, %s25_s15), 0  ;;  %p199_p3 = pnand %p802_p0, %p198_p2 }
   0x6   : > { %s803_s16 = sshll.u32 (!%p199_p3), %s883_s12, 1  ;;  %v308_v0 = vlaneseq (!%p199_p3)  ;;  %vm370_vm0 = vcmask (!%p199_p3), 1041408  }
   0x7   : > { %202 = sbr.rel (%p199_p3) target bundleno = 112 (0x70), region = 32  ;;  %p254_p4 = scmp.lt.s32.totalorder (!%p199_p3), %s803_s16, 7 }
   0x8   : > { %v933_v1 = vshrl.u32 (!%p199_p3), %v308_v0, 7  ;;  %vm509_vm1 = vcmp.lt.s32.totalorder (!%p199_p3), %v308_v0, 256 }
   0xa   : > { %v310_v2 = vsub.s32 (!%p199_p3), 0, %v933_v1  ;;  %v314_v3 = vsub.s32 (!%p199_p3), 2, %v933_v1  ;;  %v516_v4 = vsub.s32 (!%p199_p3), 1, %v933_v1  ;;  %v520_v5 = vsub.s32 (!%p199_p3), 3, %v933_v1 }
   0xe   : > { %s1001_s16 = smov (!%p254_p4, %s803_s16), 7 }
   0xf   : > { %s937_s17 = sshll.u32 %s1001_s16, 2 }
  0x10   : > { %s261_s20 = scalar_lea.vmem %s992_s0, %s937_s17  ;;  %s273_s23 = scalar_lea.vmem %s993_s1, %s937_s17 }
  0x11   : > { %v300_v6 = vld [vmem:[%s261_s20] sm:$0xf]  ;;  %v301_v7 = vld [vmem:[%s261_s20 + $0x4] sm:$0xf]  ;;  %s285_s26 = scalar_lea.vmem %s994_s2, %s937_s17  ;;  %s297_s29 = scalar_lea.vmem %s995_s3, %s937_s17 }
  0x12   : > { %v815_v8 = vld.sshfl [vmem:[%s273_s23] sm:$0x33 pattern:$0x76325410]  ;;  %v311_v9 = vrot.slane %v300_v6, %v310_v2  ;;  %v315_v10 = vrot.slane %v300_v6, %v314_v3  ;;  %v319_v11 = vrot.slane %v301_v7, %v310_v2  ;;  %v323_v12 = vrot.slane %v301_v7, %v314_v3 }
  0x13   : > { %v816_v13 = vld.sshfl [vmem:[%s273_s23 + $0x4] sm:$0x33 pattern:$0x76325410]  ;;  %v353_v14 = vcombine.high %v815_v8, %v815_v8  ;;  %v517_v15 = vrot.slane %v300_v6, %v516_v4  ;;  %v521_v16 = vrot.slane %v300_v6, %v520_v5  ;;  %v525_v17 = vrot.slane %v301_v7, %v516_v4 }
  0x14   : > { %v331_v18 = vrot.slane %v311_v9, %v310_v2  ;;  %v335_v19 = vrot.slane %v315_v10, %v310_v2  ;;  %v339_v20 = vrot.slane %v319_v11, %v310_v2  ;;  %v343_v21 = vrot.slane %v323_v12, %v310_v2 }
  0x15   : > { %v361_v22 = vcombine.high %v816_v13, %v816_v13  ;;  %v529_v23 = vrot.slane %v301_v7, %v520_v5  ;;  %v537_v24 = vrot.slane %v517_v15, %v516_v4  ;;  %v541_v29 = vrot.slane %v521_v16, %v516_v4 }
  0x16   : > { %v366_v25 = vmul.f32 %v815_v8, %v331_v18  ;;  %v367_v26 = vmul.f32 %v353_v14, %v335_v19  ;;  %v368_v27 = vmul.f32 %v816_v13, %v339_v20  ;;  %v545_v30 = vrot.slane %v525_v17, %v516_v4 }
  0x17   : > { %v369_v28 = vmul.f32 %v361_v22, %v343_v21  ;;  %v549_v31 = vrot.slane %v529_v23, %v516_v4  ;;  %v550_v35 = vmul.f32 %v815_v8, %v537_v24  ;;  %v551_v38 = vmul.f32 %v541_v29, %v353_v14 }
  0x18   : > { %v371_v32 = vsel %vm370_vm0, %v366_v25, 0.0  ;;  %v372_v33 = vsel %vm370_vm0, %v368_v27, 0.0  ;;  %v374_v34 = vsel %vm370_vm0, %v367_v26, 0.0  ;;  %v552_v39 = vmul.f32 %v816_v13, %v545_v30 }
  0x19   : > { %v373_v36 = vadd.f32 %v372_v33, %v371_v32  ;;  %v375_v37 = vsel %vm370_vm0, %v369_v28, 0.0  ;;  %v553_v41 = vmul.f32 %v549_v31, %v361_v22  ;;  %v554_v42 = vsel %vm370_vm0, %v550_v35, 0.0 }
  0x1a   : > { %v376_v40 = vadd.f32 %v375_v37, %v374_v34  ;;  %v555_v44 = vsel %vm370_vm0, %v552_v39, 0.0  ;;  %v557_v45 = vsel %vm370_vm0, %v551_v38, 0.0 }
  0x1b   : > { %v377_v43 = vmul.f32 0.70710677, %v373_v36  ;;  %v556_v47 = vadd.f32 %v555_v44, %v554_v42  ;;  %v558_v48 = vsel %vm370_vm0, %v553_v41, 0.0 }
  0x1c   : > { %v378_v46 = vmul.f32 0.70710677, %v376_v40  ;;  %v559_v50 = vadd.f32 %v558_v48, %v557_v45 }
  0x1d   : > { %v379_v49 = vsel %vm370_vm0, %v377_v43, -inf  ;;  %v560_v53 = vmul.f32 0.70710677, %v556_v47 }
  0x1e   : > { %v380_v51 = vrot.slane %v379_v49, 4  ;;  %v386_v52 = vsel %vm370_vm0, %v378_v46, -inf  ;;  %v561_v55 = vmul.f32 0.70710677, %v559_v50 }
  0x1f   : > { %v387_v54 = vrot.slane %v386_v52, 4  ;;  %v562_v57 = vsel %vm370_vm0, %v560_v53, -inf }
  0x20   : > { %v381_v56 = vmax.f32 %v379_v49, %v380_v51  ;;  %v563_v59 = vrot.slane %v562_v57, 4  ;;  %v569_v60 = vsel %vm370_vm0, %v561_v55, -inf }
  0x21   : > { %v388_v58 = vmax.f32 %v386_v52, %v387_v54  ;;  %v570_v62 = vrot.slane %v569_v60, 4 }
  0x22   : > { %v382_v61 = vrot.slane %v381_v56, 2  ;;  %v564_v2 = vmax.f32 %v562_v57, %v563_v59  ;;  %v818_v59 = vld.sshfl [vmem:[%s285_s26 + $0x4] sm:$0x33 pattern:$0x76325410] }
  0x23   : > { %v389_v63 = vrot.slane %v388_v58, 2  ;;  %v571_v4 = vmax.f32 %v569_v60, %v570_v62  ;;  %v434_v62 = vcombine.high %v818_v59, %v818_v59 }
  0x24   : > { %v383_v3 = vmax.f32 %v381_v56, %v382_v61  ;;  %v565_v6 = vrot.slane %v564_v2, 2 }
  0x25   : > { %v390_v5 = vmax.f32 %v388_v58, %v389_v63  ;;  %v572_v8 = vrot.slane %v571_v4, 2  ;;  %v817_v58 = vld.sshfl [vmem:[%s285_s26] sm:$0x33 pattern:$0x76325410] }
  0x26   : > { %v384_v7 = vrot.slane %v383_v3, 1  ;;  %v566_v10 = vmax.f32 %v564_v2, %v565_v6  ;;  %v426_v61 = vcombine.high %v817_v58, %v817_v58 }
  0x27   : > { %v391_v9 = vrot.slane %v390_v5, 1  ;;  %v573_v12 = vmax.f32 %v571_v4, %v572_v8 }
  0x28   : > { %v385_v11 = vmax.f32 %v383_v3, %v384_v7  ;;  %v567_v14 = vrot.slane %v566_v10, 1  ;;  %v893_v3 = vmov 1966171168  }
  0x29   : > { %v392_v13 = vmax.f32 %v390_v5, %v391_v9  ;;  %v574_v16 = vrot.slane %v573_v12, 1  ;;  %v477_v4 = vunpack.c.l.s4 %v893_v3 }
  0x2a   : > { %v393_v15 = vsub.f32 %v377_v43, %v385_v11  ;;  %v568_v18 = vmax.f32 %v566_v10, %v567_v14 }
  0x2b   : > { %v394_v17 = vsub.f32 %v378_v46, %v392_v13  ;;  %v575_v20 = vmax.f32 %v573_v12, %v574_v16 }
  0x2c   : > { %v395_v19 = vmul.f32 1.442695, %v393_v15  ;;  %v576_v22 = vsub.f32 %v560_v53, %v568_v18  ;;  %v478_v15 = vunpack.c.0.s8 %v477_v4 }
  0x2d   : > { %v397_v21 = vmul.f32 1.442695, %v394_v17  ;;  %v577_v23 = vsub.f32 %v561_v55, %v575_v20 }
  0x2e   : > { %853 = vpow2.f32 %v395_v19  ;;  %v578_v24 = vmul.f32 1.442695, %v576_v22 }
  0x2f   : > { %855 = vpow2.f32 %v397_v21  ;;  %v580_v25 = vmul.f32 1.442695, %v577_v23 }
  0x30   : > { %857 = vpow2.f32 %v578_v24 }
  0x31   : > { %859 = vpow2.f32 %v580_v25 }
  0x38   : > { %v854_v26 = vpop.eup %853 }
  0x39   : > { %v856_v27 = vpop.eup %855  ;;  %v399_v28 = vsel %vm370_vm0, %v854_v26, 0.0 }
  0x3a   : > { %v400_v29 = vrot.slane %v399_v28, 4  ;;  %v406_v30 = vsel %vm370_vm0, %v856_v27, 0.0  ;;  %v858_v31 = vpop.eup %857 }
  0x3b   : > { %v407_v32 = vrot.slane %v406_v30, 4  ;;  %v860_v33 = vpop.eup %859  ;;  %v582_v35 = vsel %vm370_vm0, %v858_v31, 0.0 }
  0x3c   : > { %v401_v34 = vadd.f32 %v400_v29, %v399_v28  ;;  %v583_v37 = vrot.slane %v582_v35, 4  ;;  %v589_v38 = vsel %vm370_vm0, %v860_v33, 0.0 }
  0x3d   : > { %v408_v36 = vadd.f32 %v407_v32, %v406_v30  ;;  %v590_v40 = vrot.slane %v589_v38, 4 }
  0x3e   : > { %v402_v39 = vrot.slane %v401_v34, 2  ;;  %v584_v42 = vadd.f32 %v583_v37, %v582_v35 }
  0x3f   : > { %v409_v41 = vrot.slane %v408_v36, 2  ;;  %v591_v44 = vadd.f32 %v590_v40, %v589_v38 }
  0x40   : > { %v403_v43 = vadd.f32 %v402_v39, %v401_v34  ;;  %v585_v46 = vrot.slane %v584_v42, 2 }
  0x41   : > { %v410_v45 = vadd.f32 %v409_v41, %v408_v36  ;;  %v592_v48 = vrot.slane %v591_v44, 2 }
  0x42   : > { %v404_v47 = vrot.slane %v403_v43, 1  ;;  %v586_v50 = vadd.f32 %v585_v46, %v584_v42 }
  0x43   : > { %v411_v49 = vrot.slane %v410_v45, 1  ;;  %v593_v52 = vadd.f32 %v592_v48, %v591_v44 }
  0x44   : > { %v405_v51 = vadd.f32 %v404_v47, %v403_v43  ;;  %v587_v54 = vrot.slane %v586_v50, 1 }
  0x45   : > { %v412_v53 = vadd.f32 %v411_v49, %v410_v45  ;;  %v594_v55 = vrot.slane %v593_v52, 1 }
  0x46   : > { %861 = vrcp.f32 %v405_v51  ;;  %v588_v56 = vadd.f32 %v587_v54, %v586_v50 }
  0x47   : > { %863 = vrcp.f32 %v412_v53  ;;  %v595_v57 = vadd.f32 %v594_v55, %v593_v52 }
  0x48   : > { %865 = vrcp.f32 %v588_v56 }
  0x49   : > { %867 = vrcp.f32 %v595_v57 }
  0x50   : > { %v862_v60 = vpop.eup %861 }
  0x51   : > { %v864_v63 = vpop.eup %863  ;;  %v414_v2 = vmul.f32 %v862_v60, %v854_v26 }
  0x52   : > { %v416_v5 = vmul.f32 %v864_v63, %v856_v27  ;;  %v866_v6 = vpop.eup %865 }
  0x53   : > { %v439_v7 = vmul.f32 %v817_v58, %v414_v2  ;;  %v441_v8 = vmul.f32 %v818_v59, %v414_v2  ;;  %v868_v9 = vpop.eup %867  ;;  %v597_v12 = vmul.f32 %v866_v6, %v858_v31 }
  0x54   : > { %v440_v10 = vmul.f32 %v426_v61, %v416_v5  ;;  %v442_v11 = vmul.f32 %v434_v62, %v416_v5  ;;  %v599_v16 = vmul.f32 %v868_v9, %v860_v33 }
  0x55   : > { %v443_v13 = vsel %vm370_vm0, %v439_v7, 0.0  ;;  %v457_v14 = vsel %vm370_vm0, %v441_v8, 0.0  ;;  %v600_v20 = vmul.f32 %v817_v58, %v597_v12  ;;  %v602_v23 = vmul.f32 %v818_v59, %v597_v12 }
  0x56   : > { %v444_v17 = vrot.slane %v443_v13, 4  ;;  %v450_v18 = vsel %vm370_vm0, %v440_v10, 0.0  ;;  %v458_v19 = vrot.slane %v457_v14, 4  ;;  %v601_v22 = vmul.f32 %v599_v16, %v426_v61 }
  0x57   : > { %v451_v21 = vrot.slane %v450_v18, 4  ;;  %v603_v24 = vmul.f32 %v599_v16, %v434_v62  ;;  %v604_v26 = vsel %vm370_vm0, %v600_v20, 0.0  ;;  %v464_v28 = vsel %vm370_vm0, %v442_v11, 0.0 }
  0x58   : > { %v445_v25 = vadd.f32 %v444_v17, %v443_v13  ;;  %v459_v27 = vadd.f32 %v458_v19, %v457_v14  ;;  %v618_v30 = vsel %vm370_vm0, %v602_v23, 0.0  ;;  %v605_v31 = vrot.slane %v604_v26, 4 }
  0x59   : > { %v452_v29 = vadd.f32 %v451_v21, %v450_v18  ;;  %v611_v32 = vsel %vm370_vm0, %v601_v22, 0.0  ;;  %v619_v34 = vrot.slane %v618_v30, 4  ;;  %v465_v39 = vrot.slane %v464_v28, 4 }
  0x5a   : > { %v446_v33 = vrot.slane %v445_v25, 2  ;;  %v612_v35 = vrot.slane %v611_v32, 4  ;;  %v460_v36 = vrot.slane %v459_v27, 2  ;;  %v606_v38 = vadd.f32 %v605_v31, %v604_v26 }
  0x5b   : > { %v453_v37 = vrot.slane %v452_v29, 2  ;;  %v625_v40 = vsel %vm370_vm0, %v603_v24, 0.0  ;;  %v620_v44 = vadd.f32 %v619_v34, %v618_v30  ;;  %v466_v47 = vadd.f32 %v465_v39, %v464_v28 }
  0x5c   : > { %v447_v41 = vadd.f32 %v446_v33, %v445_v25  ;;  %v613_v42 = vadd.f32 %v612_v35, %v611_v32  ;;  %v461_v43 = vadd.f32 %v460_v36, %v459_v27  ;;  %v607_v46 = vrot.slane %v606_v38, 2 }
  0x5d   : > { %v454_v45 = vadd.f32 %v453_v37, %v452_v29  ;;  %v626_v48 = vrot.slane %v625_v40, 4  ;;  %v621_v52 = vrot.slane %v620_v44, 2  ;;  %v467_v55 = vrot.slane %v466_v47, 2 }
  0x5e   : > { %v448_v49 = vrot.slane %v447_v41, 1  ;;  %v614_v50 = vrot.slane %v613_v42, 2  ;;  %v462_v51 = vrot.slane %v461_v43, 1  ;;  %v608_v54 = vadd.f32 %v607_v46, %v606_v38 }
  0x5f   : > { %v455_v53 = vrot.slane %v454_v45, 1  ;;  %v627_v56 = vadd.f32 %v626_v48, %v625_v40  ;;  %v481_v58 = vsub.s32 %v478_v15, %v933_v1  ;;  %v622_v60 = vadd.f32 %v621_v52, %v620_v44 }
  0x60   : > { %v449_v57 = vadd.f32 %v448_v49, %v447_v41  ;;  %v615_v59 = vadd.f32 %v614_v50, %v613_v42  ;;  %v609_v62 = vrot.slane %v608_v54, 1  ;;  %v468_v63 = vadd.f32 %v467_v55, %v466_v47 }
  0x61   : > { %v456_v61 = vadd.f32 %v455_v53, %v454_v45  ;;  %v628_v2 = vrot.slane %v627_v56, 2  ;;  %v463_v4 = vadd.f32 %v462_v51, %v461_v43  ;;  %v623_v5 = vrot.slane %v622_v60, 1 }
  0x62   : > { %v616_v3 = vrot.slane %v615_v59, 1  ;;  %v610_v7 = vadd.f32 %v609_v62, %v608_v54  ;;  %v469_v8 = vrot.slane %v468_v63, 1 }
  0x63   : > { %v475_v6 = vcombine.low %v449_v57, %v456_v61  ;;  %v629_v9 = vadd.f32 %v628_v2, %v627_v56  ;;  %v624_v13 = vadd.f32 %v623_v5, %v622_v60 }
  0x64   : > { %v617_v10 = vadd.f32 %v616_v3, %v615_v59  ;;  %v470_v12 = vadd.f32 %v469_v8, %v468_v63 }
  0x65   : > { %v482_v11 = vrot.slane %v475_v6, %v481_v58  ;;  %v630_v14 = vrot.slane %v629_v9, 1 }
  0x66   : > { %v636_v1 = vcombine.low %v610_v7, %v617_v10  ;;  %v490_v16 = vcombine.low %v463_v4, %v470_v12 }
  0x67   : > { %v489_v15 = vrot.slane %v482_v11, %v481_v58  ;;  %v631_v17 = vadd.f32 %v630_v14, %v629_v9 }
  0x68   : > { %v643_v18 = vrot.slane %v636_v1, %v481_v58  ;;  %v497_v19 = vrot.slane %v490_v16, %v481_v58 }
  0x69   : > { %511 = vst.msk [vmem:[%s297_s29] ss:$2 sm:$0x3] %vm509_vm1, %v489_v15  ;;  %v651_v20 = vcombine.low %v624_v13, %v631_v17 }
  0x6a   : > { %v650_v21 = vrot.slane %v643_v18, %v481_v58  ;;  %v504_v22 = vrot.slane %v497_v19, %v481_v58 }
  0x6b   : > { %v658_v23 = vrot.slane %v651_v20, %v481_v58 }
  0x6c   : > { %820 = vst.msk [vmem:[%s297_s29 + $0x1] ss:$2 sm:$0x3] %vm509_vm1, %v650_v21  ;;  %819 = vst.msk [vmem:[%s297_s29 + $0x4] ss:$2 sm:$0x3] %vm509_vm1, %v504_v22 }
  0x6d   : > { %v665_v24 = vrot.slane %v658_v23, %v481_v58 }
  0x6f   : > { %821 = vst.msk [vmem:[%s297_s29 + $0x5] ss:$2 sm:$0x3] %vm509_vm1, %v665_v24 }
  0x70 PF: > { %s13_s14 = sadd.s32 1, %s891_s14   ;;  %s996_s12 = smov %s887_s13 }
  0x71   : > { %p10_p5 = scmp.ge.s32.totalorder %s13_s14, 6   ;;  %s997_s13 = smov %s999_s15 }
  0x73   :  { %12 = sbr.rel (!%p10_p5) target bundleno = 2 (0x2), region = 71 }

// kernel: block_forward.20
= control target key start
LH: loop header
LB: loop body
LE: loop exit
PB: predicated region body
PF: predicated region fallthrough
CT: control target
= control target key end

     0   :  { %v333_v3 = vmov 0.0   ;;  %v334_v8 = vmov 0   ;;  %s565_s1 = inlined_call_operand.vmem [shape: f32[128,512], index: 1, kind: input, shape index: {}]   ;;  %s566_s2 = inlined_call_operand.vmem [shape: f32[8,1], index: 2, kind: input, shape index: {}]   ;;  %s567_s0 = inlined_call_operand.vmem [shape: f32[8,128], index: 0, kind: input, shape index: {}]   ;;  %s568_s3 = inlined_call_operand.vmem [shape: f32[8,512], index: 3, kind: output, shape index: {}]  }
   0x1   :  { %v28_v0 = vld [vmem:[%s565_s1 + $0x8] sm:$0xff]  ;;  %v30_v2 = vld [vmem:[%s565_s1 + $0x18] sm:$0xff]  ;;  %155 = vmatprep.mubr.f32.mxu0 %v333_v3  ;;  %226 = vmatprep.mubr.f32.mxu1 %v333_v3  ;;  %v27_v6 = vld [vmem:[%s565_s1] sm:$0xff] }
   0x2   :  { %v32_v1 = vld [vmem:[%s565_s1 + $0x28] sm:$0xff]  ;;  %v34_v5 = vld [vmem:[%s565_s1 + $0x38] sm:$0xff]  ;;  %v31_v7 = vld [vmem:[%s565_s1 + $0x20] sm:$0xff]  ;;  %332 = vset.pattern.permute.xlu0 %v334_v8 }
   0x3   :  { %v266_v4 = vpack.c.bf16 %v32_v1, %v28_v0  ;;  %v298_v9 = vpack.c.bf16 %v34_v5, %v30_v2  ;;  %v268_v10 = vpack.c.bf16 %v31_v7, %v27_v6  ;;  %v29_v11 = vld [vmem:[%s565_s1 + $0x10] sm:$0xff]  ;;  %v36_v13 = vld [vmem:[%s565_s1 + $0x48] sm:$0xff]  ;;  %v38_v16 = vld [vmem:[%s565_s1 + $0x58] sm:$0xff] }
   0x4   :  { %v33_v12 = vld [vmem:[%s565_s1 + $0x30] sm:$0xff]  ;;  %v40_v15 = vld [vmem:[%s565_s1 + $0x68] sm:$0xff]  ;;  %v42_v17 = vld [vmem:[%s565_s1 + $0x78] sm:$0xff] }
   0x5   :  { %267 = vmatprep.subr.bf16.mxu0 %v266_v4  ;;  %v300_v14 = vpack.c.bf16 %v33_v12, %v29_v11  ;;  %299 = vmatprep.subr.bf16.mxu1 %v298_v9  ;;  %v270_v18 = vpack.c.bf16 %v40_v15, %v36_v13  ;;  %v302_v19 = vpack.c.bf16 %v42_v17, %v38_v16  ;;  %v35_v20 = vld [vmem:[%s565_s1 + $0x40] sm:$0xff]  ;;  %v37_v22 = vld [vmem:[%s565_s1 + $0x50] sm:$0xff]  ;;  %v44_v25 = vld [vmem:[%s565_s1 + $0x88] sm:$0xff] }
   0x6   :  { %269 = vmatpush1.bf16.msra.mxu0 %v268_v10  ;;  %v39_v21 = vld [vmem:[%s565_s1 + $0x60] sm:$0xff]  ;;  %v41_v24 = vld [vmem:[%s565_s1 + $0x70] sm:$0xff]  ;;  %v48_v26 = vld [vmem:[%s565_s1 + $0xa8] sm:$0xff] }
   0x7   :  { %301 = vmatpush1.bf16.msra.mxu1 %v300_v14  ;;  %v272_v23 = vpack.c.bf16 %v39_v21, %v35_v20  ;;  %271 = vmatprep.subr.bf16.mxu0 %v270_v18  ;;  %v304_v27 = vpack.c.bf16 %v41_v24, %v37_v22  ;;  %v274_v28 = vpack.c.bf16 %v48_v26, %v44_v25  ;;  %v46_v29 = vld [vmem:[%s565_s1 + $0x98] sm:$0xff]  ;;  %v43_v31 = vld [vmem:[%s565_s1 + $0x80] sm:$0xff]  ;;  %v45_v34 = vld [vmem:[%s565_s1 + $0x90] sm:$0xff] }
   0x8   :  { %303 = vmatprep.subr.bf16.mxu1 %v302_v19  ;;  %v50_v30 = vld [vmem:[%s565_s1 + $0xb8] sm:$0xff]  ;;  %v47_v33 = vld [vmem:[%s565_s1 + $0xa0] sm:$0xff]  ;;  %v49_v35 = vld [vmem:[%s565_s1 + $0xb0] sm:$0xff] }
   0x9   :  { %v306_v32 = vpack.c.bf16 %v50_v30, %v46_v29  ;;  %v276_v36 = vpack.c.bf16 %v47_v33, %v43_v31  ;;  %v52_v37 = vld [vmem:[%s565_s1 + $0xc8] sm:$0xff]  ;;  %v54_v39 = vld [vmem:[%s565_s1 + $0xd8] sm:$0xff]  ;;  %v308_v40 = vpack.c.bf16 %v49_v35, %v45_v34  ;;  %v51_v43 = vld [vmem:[%s565_s1 + $0xc0] sm:$0xff] }
   0xa   :  { %273 = vmatpush1.bf16.msra.mxu0 %v272_v23  ;;  %v56_v38 = vld [vmem:[%s565_s1 + $0xe8] sm:$0xff]  ;;  %v58_v42 = vld [vmem:[%s565_s1 + $0xf8] sm:$0xff]  ;;  %v55_v44 = vld [vmem:[%s565_s1 + $0xe0] sm:$0xff] }
   0xb   :  { %305 = vmatpush1.bf16.msra.mxu1 %v304_v27  ;;  %275 = vmatprep.subr.bf16.mxu0 %v274_v28  ;;  %v278_v41 = vpack.c.bf16 %v56_v38, %v52_v37  ;;  %v310_v45 = vpack.c.bf16 %v58_v42, %v54_v39  ;;  %v53_v46 = vld [vmem:[%s565_s1 + $0xd0] sm:$0xff]  ;;  %v60_v48 = vld [vmem:[%s565_s1 + $0x108] sm:$0xff]  ;;  %v62_v50 = vld [vmem:[%s565_s1 + $0x118] sm:$0xff]  ;;  %v280_v52 = vpack.c.bf16 %v55_v44, %v51_v43 }
   0xc   :  { %307 = vmatprep.subr.bf16.mxu1 %v306_v32  ;;  %v57_v47 = vld [vmem:[%s565_s1 + $0xf0] sm:$0xff]  ;;  %v64_v49 = vld [vmem:[%s565_s1 + $0x128] sm:$0xff]  ;;  %v66_v51 = vld [vmem:[%s565_s1 + $0x138] sm:$0xff] }
   0xd   :  { %v312_v53 = vpack.c.bf16 %v57_v47, %v53_v46  ;;  %v282_v54 = vpack.c.bf16 %v64_v49, %v60_v48  ;;  %v59_v55 = vld [vmem:[%s565_s1 + $0x100] sm:$0xff]  ;;  %v61_v57 = vld [vmem:[%s565_s1 + $0x110] sm:$0xff]  ;;  %v314_v58 = vpack.c.bf16 %v66_v51, %v62_v50  ;;  %v68_v60 = vld [vmem:[%s565_s1 + $0x148] sm:$0xff] }
   0xe   :  { %277 = vmatpush1.bf16.msra.mxu0 %v276_v36  ;;  %v63_v56 = vld [vmem:[%s565_s1 + $0x120] sm:$0xff]  ;;  %v65_v59 = vld [vmem:[%s565_s1 + $0x130] sm:$0xff]  ;;  %v72_v61 = vld [vmem:[%s565_s1 + $0x168] sm:$0xff] }
   0xf   :  { %309 = vmatpush1.bf16.msra.mxu1 %v308_v40  ;;  %279 = vmatprep.subr.bf16.mxu0 %v278_v41  ;;  %v70_v62 = vld [vmem:[%s565_s1 + $0x158] sm:$0xff]  ;;  %v284_v0 = vpack.c.bf16 %v63_v56, %v59_v55  ;;  %v316_v1 = vpack.c.bf16 %v65_v59, %v61_v57  ;;  %v286_v2 = vpack.c.bf16 %v72_v61, %v68_v60  ;;  %v67_v3 = vld [vmem:[%s565_s1 + $0x140] sm:$0xff]  ;;  %v69_v5 = vld [vmem:[%s565_s1 + $0x150] sm:$0xff] }
  0x10   :  { %311 = vmatprep.subr.bf16.mxu1 %v310_v45  ;;  %v74_v63 = vld [vmem:[%s565_s1 + $0x178] sm:$0xff]  ;;  %v71_v4 = vld [vmem:[%s565_s1 + $0x160] sm:$0xff]  ;;  %v73_v7 = vld [vmem:[%s565_s1 + $0x170] sm:$0xff] }
  0x11   :  { %v318_v6 = vpack.c.bf16 %v74_v63, %v70_v62  ;;  %v76_v8 = vld [vmem:[%s565_s1 + $0x188] sm:$0xff]  ;;  %v78_v10 = vld [vmem:[%s565_s1 + $0x198] sm:$0xff]  ;;  %v288_v12 = vpack.c.bf16 %v71_v4, %v67_v3  ;;  %v75_v13 = vld [vmem:[%s565_s1 + $0x180] sm:$0xff]  ;;  %v320_v14 = vpack.c.bf16 %v73_v7, %v69_v5 }
  0x12   :  { %281 = vmatpush1.bf16.msra.mxu0 %v280_v52  ;;  %v80_v9 = vld [vmem:[%s565_s1 + $0x1a8] sm:$0xff]  ;;  %v82_v11 = vld [vmem:[%s565_s1 + $0x1b8] sm:$0xff]  ;;  %v79_v16 = vld [vmem:[%s565_s1 + $0x1a0] sm:$0xff] }
  0x13   :  { %313 = vmatpush1.bf16.msra.mxu1 %v312_v53  ;;  %283 = vmatprep.subr.bf16.mxu0 %v282_v54  ;;  %v290_v15 = vpack.c.bf16 %v80_v9, %v76_v8  ;;  %v77_v17 = vld [vmem:[%s565_s1 + $0x190] sm:$0xff]  ;;  %v248_v18 = vld [vmem:[%s566_s2] sm:$0xff]  ;;  %v322_v19 = vpack.c.bf16 %v82_v11, %v78_v10  ;;  %v84_v21 = vld [vmem:[%s565_s1 + $0x1c8] sm:$0xff]  ;;  %v292_v25 = vpack.c.bf16 %v79_v16, %v75_v13 }
  0x14   :  { %315 = vmatprep.subr.bf16.mxu1 %v314_v58  ;;  %v81_v20 = vld [vmem:[%s565_s1 + $0x1b0] sm:$0xff]  ;;  %v88_v22 = vld [vmem:[%s565_s1 + $0x1e8] sm:$0xff]  ;;  %251 = vperm.xlu0 %332, %v248_v18   ;;  %v86_v23 = vld [vmem:[%s565_s1 + $0x1d8] sm:$0xff] }
  0x15   :  { %v90_v24 = vld [vmem:[%s565_s1 + $0x1f8] sm:$0xff]  ;;  %v324_v26 = vpack.c.bf16 %v81_v20, %v77_v17  ;;  %v294_v27 = vpack.c.bf16 %v88_v22, %v84_v21  ;;  %v83_v28 = vld [vmem:[%s565_s1 + $0x1c0] sm:$0xff]  ;;  %v85_v31 = vld [vmem:[%s565_s1 + $0x1d0] sm:$0xff] }
  0x16   :  { %285 = vmatpush1.bf16.msra.mxu0 %v284_v0  ;;  %v87_v29 = vld [vmem:[%s565_s1 + $0x1e0] sm:$0xff]  ;;  %v326_v30 = vpack.c.bf16 %v90_v24, %v86_v23  ;;  %v89_v32 = vld [vmem:[%s565_s1 + $0x1f0] sm:$0xff] }
  0x17   :  { %317 = vmatpush1.bf16.msra.mxu1 %v316_v1  ;;  %287 = vmatprep.subr.bf16.mxu0 %v286_v2  ;;  %v296_v33 = vpack.c.bf16 %v87_v29, %v83_v28  ;;  %v328_v34 = vpack.c.bf16 %v89_v32, %v85_v31  ;;  %v26_v35 = vld [vmem:[%s567_s0] sm:$0xff] }
  0x18   :  { %319 = vmatprep.subr.bf16.mxu1 %v318_v6 }
  0x1a   :  { %289 = vmatpush1.bf16.msra.mxu0 %v288_v12 }
  0x1b   :  { %321 = vmatpush1.bf16.msra.mxu1 %v320_v14  ;;  %291 = vmatprep.subr.bf16.mxu0 %v290_v15 }
  0x1c   :  { %323 = vmatprep.subr.bf16.mxu1 %v322_v19 }
  0x1e   :  { %293 = vmatpush1.bf16.msra.mxu0 %v292_v25 }
  0x1f   :  { %325 = vmatpush1.bf16.msra.mxu1 %v324_v26  ;;  %295 = vmatprep.subr.bf16.mxu0 %v294_v27 }
  0x20   :  { %327 = vmatprep.subr.bf16.mxu1 %v326_v30 }
  0x22   :  { %297 = vmatpush1.bf16.msra.mxu0 %v296_v33 }
  0x23   :  { %329 = vmatpush1.bf16.msra.mxu1 %v328_v34 }
  0x25   :  { %156 = vmatmul.mubr.f32.vlgmr.msra.gmra.mrb[0].mxu0 %v26_v35 }
  0x26   :  { %227 = vmatmul.mubr.f32.vlgmr.msra.gmra.mrb[0].mxu1 %v26_v35 }
  0x93   :  { %v252_v36 = vpop.permute.xlu0 %251 }
  0xf8   :  { %v157_v37 = vpop.f32.mrb[0].mxu0 }
  0xf9   :  { %v254_v38 = vadd.f32 %v252_v36, %v157_v37  ;;  %v228_v39 = vpop.f32.mrb[0].mxu1  ;;  %v159_v40 = vpop.f32.mrb[1].mxu0 }
  0xfa   :  { %v256_v41 = vadd.f32 %v252_v36, %v228_v39  ;;  %v255_v42 = vadd.f32 %v252_v36, %v159_v40  ;;  %v230_v43 = vpop.f32.mrb[1].mxu1 }
  0xfb   :  { %258 = vst [vmem:[%s568_s3] sm:$0xff] %v254_v38  ;;  %v257_v44 = vadd.f32 %v252_v36, %v230_v43 }
  0xfc   :  { %260 = vst [vmem:[%s568_s3 + $0x10] sm:$0xff] %v256_v41  ;;  %259 = vst [vmem:[%s568_s3 + $0x8] sm:$0xff] %v255_v42 }
  0xfd   :  { %261 = vst [vmem:[%s568_s3 + $0x18] sm:$0xff] %v257_v44 }

// kernel: block_forward.23
= control target key start
LH: loop header
LB: loop body
LE: loop exit
PB: predicated region body
PF: predicated region fallthrough
CT: control target
= control target key end

     0   :  { %v67_v0 = vmov 0   ;;  %s134_s1 = inlined_call_operand.vmem [shape: f32[8,1], index: 1, kind: input, shape index: {}]   ;;  %s135_s2 = inlined_call_operand.vmem [shape: f32[8,1], index: 2, kind: input, shape index: {}]   ;;  %s136_s3 = inlined_call_operand.vmem [shape: f32[8,1], index: 3, kind: input, shape index: {}]   ;;  %s137_s4 = inlined_call_operand.vmem [shape: f32[8,1], index: 4, kind: input, shape index: {}]   ;;  %s138_s0 = inlined_call_operand.vmem [shape: f32[8,512], index: 0, kind: input, shape index: {}]   ;;  %s139_s5 = inlined_call_operand.vmem [shape: f32[8,512], index: 5, kind: output, shape index: {}]  }
   0x1   :  { %65 = vset.pattern.permute.xlu0 %v67_v0  ;;  %v24_v1 = vld [vmem:[%s134_s1] sm:$0xff]  ;;  %66 = vset.pattern.permute.xlu1 %v67_v0  ;;  %v21_v8 = vld [vmem:[%s138_s0 + $0x8] sm:$0xff]  ;;  %v22_v9 = vld [vmem:[%s138_s0 + $0x10] sm:$0xff] }
   0x2   :  { %v34_v2 = vld [vmem:[%s135_s2] sm:$0xff]  ;;  %27 = vperm.xlu0 %65, %v24_v1   ;;  %v23_v10 = vld [vmem:[%s138_s0 + $0x18] sm:$0xff] }
   0x3   :  { %v35_v3 = vld [vmem:[%s136_s3] sm:$0xff] }
   0x4   :  { %v36_v4 = vmul.f32 %v35_v3, %v34_v2  ;;  %v46_v5 = vld [vmem:[%s137_s4] sm:$0xff] }
   0x5   :  { %49 = vperm.xlu1 %66, %v46_v5   ;;  %v20_v6 = vld [vmem:[%s138_s0] sm:$0xff] }
   0x6   :  { %39 = vperm.xlu0 %65, %v36_v4  }
  0x81   :  { %v28_v7 = vpop.permute.xlu0 %27 }
  0x82   :  { %v30_v11 = vsub.f32 %v20_v6, %v28_v7  ;;  %v31_v12 = vsub.f32 %v21_v8, %v28_v7  ;;  %v32_v13 = vsub.f32 %v22_v9, %v28_v7  ;;  %v33_v14 = vsub.f32 %v23_v10, %v28_v7 }
  0x84   :  { %v50_v16 = vpop.permute.xlu1 %49 }
  0x85   :  { %v40_v15 = vpop.permute.xlu0 %39 }
  0x86   :  { %v42_v17 = vmul.f32 %v40_v15, %v30_v11  ;;  %v43_v18 = vmul.f32 %v40_v15, %v31_v12  ;;  %v44_v19 = vmul.f32 %v40_v15, %v32_v13  ;;  %v45_v20 = vmul.f32 %v40_v15, %v33_v14 }
  0x88   :  { %v52_v21 = vadd.f32 %v50_v16, %v42_v17  ;;  %v53_v22 = vadd.f32 %v50_v16, %v43_v18  ;;  %v54_v23 = vadd.f32 %v50_v16, %v44_v19  ;;  %v55_v24 = vadd.f32 %v50_v16, %v45_v20 }
  0x8a   :  { %56 = vst [vmem:[%s139_s5] sm:$0xff] %v52_v21  ;;  %57 = vst [vmem:[%s139_s5 + $0x8] sm:$0xff] %v53_v22 }
  0x8b   :  { %58 = vst [vmem:[%s139_s5 + $0x10] sm:$0xff] %v54_v23  ;;  %59 = vst [vmem:[%s139_s5 + $0x18] sm:$0xff] %v55_v24 }

// kernel: block_forward.26
= control target key start
LH: loop header
LB: loop body
LE: loop exit
PB: predicated region body
PF: predicated region fallthrough
CT: control target
= control target key end

     0   :  { %v78_v0 = vmov 0   ;;  %s162_s1 = inlined_call_operand.vmem [shape: f32[8,1], index: 1, kind: input, shape index: {}]   ;;  %s163_s2 = inlined_call_operand.vmem [shape: f32[8,1], index: 2, kind: input, shape index: {}]   ;;  %s164_s3 = inlined_call_operand.vmem [shape: f32[8,1], index: 3, kind: input, shape index: {}]   ;;  %s165_s4 = inlined_call_operand.vmem [shape: f32[8,1], index: 4, kind: input, shape index: {}]   ;;  %s166_s0 = inlined_call_operand.vmem [shape: f32[8,512], index: 0, kind: input, shape index: {}]   ;;  %s167_s5 = inlined_call_operand.vmem [shape: f32[8,512], index: 5, kind: input, shape index: {}]   ;;  %s168_s6 = inlined_call_operand.vmem [shape: f32[8,512], index: 6, kind: output, shape index: {}]  }
   0x1   :  { %76 = vset.pattern.permute.xlu0 %v78_v0  ;;  %v27_v1 = vld [vmem:[%s162_s1] sm:$0xff]  ;;  %77 = vset.pattern.permute.xlu1 %v78_v0  ;;  %v24_v8 = vld [vmem:[%s166_s0 + $0x8] sm:$0xff]  ;;  %v25_v9 = vld [vmem:[%s166_s0 + $0x10] sm:$0xff] }
   0x2   :  { %v37_v2 = vld [vmem:[%s163_s2] sm:$0xff]  ;;  %30 = vperm.xlu0 %76, %v27_v1   ;;  %v26_v10 = vld [vmem:[%s166_s0 + $0x18] sm:$0xff]  ;;  %v60_v22 = vld [vmem:[%s167_s5 + $0x8] sm:$0xff] }
   0x3   :  { %v38_v3 = vld [vmem:[%s164_s3] sm:$0xff]  ;;  %v61_v23 = vld [vmem:[%s167_s5 + $0x10] sm:$0xff]  ;;  %v62_v24 = vld [vmem:[%s167_s5 + $0x18] sm:$0xff] }
   0x4   :  { %v39_v4 = vmul.f32 %v38_v3, %v37_v2  ;;  %v49_v5 = vld [vmem:[%s165_s4] sm:$0xff] }
   0x5   :  { %52 = vperm.xlu1 %77, %v49_v5   ;;  %v23_v6 = vld [vmem:[%s166_s0] sm:$0xff] }
   0x6   :  { %42 = vperm.xlu0 %76, %v39_v4   ;;  %v59_v21 = vld [vmem:[%s167_s5] sm:$0xff] }
  0x81   :  { %v31_v7 = vpop.permute.xlu0 %30 }
  0x82   :  { %v33_v11 = vsub.f32 %v23_v6, %v31_v7  ;;  %v34_v12 = vsub.f32 %v24_v8, %v31_v7  ;;  %v35_v13 = vsub.f32 %v25_v9, %v31_v7  ;;  %v36_v14 = vsub.f32 %v26_v10, %v31_v7 }
  0x84   :  { %v53_v16 = vpop.permute.xlu1 %52 }
  0x85   :  { %v43_v15 = vpop.permute.xlu0 %42 }
  0x86   :  { %v45_v17 = vmul.f32 %v43_v15, %v33_v11  ;;  %v46_v18 = vmul.f32 %v43_v15, %v34_v12  ;;  %v47_v19 = vmul.f32 %v43_v15, %v35_v13  ;;  %v48_v20 = vmul.f32 %v43_v15, %v36_v14 }
  0x88   :  { %v55_v25 = vadd.f32 %v53_v16, %v45_v17  ;;  %v56_v26 = vadd.f32 %v53_v16, %v46_v18  ;;  %v57_v27 = vadd.f32 %v53_v16, %v47_v19  ;;  %v58_v28 = vadd.f32 %v53_v16, %v48_v20 }
  0x8a   :  { %v63_v29 = vadd.f32 %v59_v21, %v55_v25  ;;  %v64_v30 = vadd.f32 %v60_v22, %v56_v26  ;;  %v65_v31 = vadd.f32 %v61_v23, %v57_v27  ;;  %v66_v32 = vadd.f32 %v62_v24, %v58_v28 }
  0x8c   :  { %67 = vst [vmem:[%s168_s6] sm:$0xff] %v63_v29  ;;  %68 = vst [vmem:[%s168_s6 + $0x8] sm:$0xff] %v64_v30 }
  0x8d   :  { %69 = vst [vmem:[%s168_s6 + $0x10] sm:$0xff] %v65_v31  ;;  %70 = vst [vmem:[%s168_s6 + $0x18] sm:$0xff] %v66_v32 }

// kernel: block_forward.27
= control target key start
LH: loop header
LB: loop body
LE: loop exit
PB: predicated region body
PF: predicated region fallthrough
CT: control target
= control target key end

     0   :  { %v206_v0 = vmov 0.0|0.0   ;;  %vm207_vm0 = vmmov 0   ;;  %v208_v4 = vmov 0.0   ;;  %v209_v7 = vmov 0   ;;  %s287_s1 = inlined_call_operand.vmem [shape: f32[128,128], index: 1, kind: input, shape index: {}]   ;;  %s288_s2 = inlined_call_operand.vmem [shape: f32[8,1], index: 2, kind: input, shape index: {}]   ;;  %s289_s0 = inlined_call_operand.vmem [shape: f32[8,128], index: 0, kind: input, shape index: {}]   ;;  %s290_s3 = inlined_call_operand.vmem [shape: f32[8,128], index: 3, kind: output, shape index: {}]  }
   0x1   :  { %177 = vmatprep.subr.bf16.mxu0 %v206_v0  ;;  %v21_v1 = vld [vmem:[%s287_s1] sm:$0xff]  ;;  %v22_v2 = vld [vmem:[%s287_s1 + $0x8] sm:$0xff]  ;;  %v23_v3 = vld [vmem:[%s287_s1 + $0x10] sm:$0xff]  ;;  %174 = vmatprep.mubr.msk.f32.mxu0 %vm207_vm0, %v208_v4 }
   0x2   :  { %v178_v5 = vpack.c.bf16 %v22_v2, %v21_v1  ;;  %v24_v6 = vld [vmem:[%s287_s1 + $0x18] sm:$0xff]  ;;  %205 = vset.pattern.permute.xlu0 %v209_v7  ;;  %v25_v9 = vld [vmem:[%s287_s1 + $0x20] sm:$0xff]  ;;  %v26_v10 = vld [vmem:[%s287_s1 + $0x28] sm:$0xff] }
   0x3   :  { %v181_v8 = vpack.c.bf16 %v24_v6, %v23_v3  ;;  %v113_v11 = vld [vmem:[%s288_s2] sm:$0xff]  ;;  %v184_v12 = vpack.c.bf16 %v26_v10, %v25_v9  ;;  %v27_v13 = vld [vmem:[%s287_s1 + $0x30] sm:$0xff]  ;;  %v28_v14 = vld [vmem:[%s287_s1 + $0x38] sm:$0xff] }
   0x4   :  { %179 = vmatpush3.bf16.msra.mxu0 %v178_v5  ;;  %116 = vperm.xlu0 %205, %v113_v11   ;;  %v187_v15 = vpack.c.bf16 %v28_v14, %v27_v13  ;;  %v29_v16 = vld [vmem:[%s287_s1 + $0x40] sm:$0xff]  ;;  %v30_v17 = vld [vmem:[%s287_s1 + $0x48] sm:$0xff]  ;;  %v31_v19 = vld [vmem:[%s287_s1 + $0x50] sm:$0xff] }
   0x5   :  { %180 = vmatprep.subr.bf16.mxu0 %v206_v0  ;;  %v190_v18 = vpack.c.bf16 %v30_v17, %v29_v16  ;;  %v32_v20 = vld [vmem:[%s287_s1 + $0x58] sm:$0xff]  ;;  %v33_v22 = vld [vmem:[%s287_s1 + $0x60] sm:$0xff]  ;;  %v34_v23 = vld [vmem:[%s287_s1 + $0x68] sm:$0xff] }
   0x6   :  { %v193_v21 = vpack.c.bf16 %v32_v20, %v31_v19  ;;  %v196_v24 = vpack.c.bf16 %v34_v23, %v33_v22  ;;  %v35_v25 = vld [vmem:[%s287_s1 + $0x70] sm:$0xff]  ;;  %v36_v26 = vld [vmem:[%s287_s1 + $0x78] sm:$0xff]  ;;  %v20_v28 = vld [vmem:[%s289_s0] sm:$0xff] }
   0x7   :  { %v199_v27 = vpack.c.bf16 %v36_v26, %v35_v25 }
   0x8   :  { %182 = vmatpush3.bf16.msra.mxu0 %v181_v8 }
   0x9   :  { %183 = vmatprep.subr.bf16.mxu0 %v206_v0 }
   0xc   :  { %185 = vmatpush3.bf16.msra.mxu0 %v184_v12 }
   0xd   :  { %186 = vmatprep.subr.bf16.mxu0 %v206_v0 }
  0x10   :  { %188 = vmatpush3.bf16.msra.mxu0 %v187_v15 }
  0x11   :  { %189 = vmatprep.subr.bf16.mxu0 %v206_v0 }
  0x14   :  { %191 = vmatpush3.bf16.msra.mxu0 %v190_v18 }
  0x15   :  { %192 = vmatprep.subr.bf16.mxu0 %v206_v0 }
  0x18   :  { %194 = vmatpush3.bf16.msra.mxu0 %v193_v21 }
  0x19   :  { %195 = vmatprep.subr.bf16.mxu0 %v206_v0 }
  0x1c   :  { %197 = vmatpush3.bf16.msra.mxu0 %v196_v24 }
  0x1d   :  { %198 = vmatprep.subr.bf16.mxu0 %v206_v0 }
  0x20   :  { %200 = vmatpush3.bf16.msra.mxu0 %v199_v27 }
  0x23   :  { %175 = vmatmul.mubr.f32.vlgmr.msra.gmra.mrb[0].mxu0 %v20_v28 }
  0x83   :  { %v117_v29 = vpop.permute.xlu0 %116 }
  0xf6   :  { %v103_v30 = vpop.f32.mrb[0].mxu0 }
  0xf7   :  { %v119_v31 = vadd.f32 %v117_v29, %v103_v30  ;;  %v176_v32 = vpop.f32.mrb[1].mxu0 }
  0xf9   :  { %120 = vst [vmem:[%s290_s3] sm:$0xff] %v119_v31 }

</bundles_post_ra>
